<compile_context>
chip_gen: v7x
topology: tpu7x:2x2x1
jax: 0.10.0
libtpu: 0.0.40
codegen_flags: <defaults>
</compile_context>

<pallas_src>
import functools

import jax
import jax.numpy as jnp
from jax import lax
from jax.experimental import pallas as pl
from jax.experimental.pallas import tpu as pltpu


# ----------------------------------------------------------------------------
# Fused kernel: 2-layer bidirectional LSTM + fc head, all VMEM-resident.
# ----------------------------------------------------------------------------
def _make_fused_rnn_kernel(T, Bp, H, unroll):
    TWO_H = 2 * H
    G = 8 * H  # combined gate width: 4 gates x 2 directions x H, interleaved per gate

    def kernel(x_ref, w0_ih_ref, w0_hh_ref, b0_ref,
               w1_ih_f_ref, w1_ih_b_ref, w1_hh_ref, b1_ref,
               fcw_ref, fcb_ref,
               out_ref,
               gx_ref, y0f_ref, y0b_ref):
        # x_ref:      (T*Bp, E)  bf16   embedded (dropout = identity), batch padded to Bp
        # w0_ih:      (E, G)     bf16   layer-0 input weights, both directions, interleaved cols
        # w0_hh/w1_hh:(2H, G)    bf16   block-diagonal recurrent weights (rows = [h_f ; h_b])
        # w1_ih_f/b:  (H, G)     bf16   layer-1 input weights from y0_fwd / y0_bwd features
        # b0/b1:      (1, G)     f32    combined biases (b_ih + b_hh) per direction/gate
        # fcw:        (1, 2H)    f32    fc weight for cat([h1_fwd, h1_bwd])
        # fcb:        (1, 1)     f32
        # out_ref:    (Bp, 1)    f32
        # gx_ref:     (T*Bp, G)  f32    scratch, reused for layer-0 then layer-1 input projection
        # y0f/y0b:    (T*Bp, H)  f32    scratch, layer-0 outputs in original time order

        # Hoisted lane mask: within each 2H gate block, first H lanes = forward direction.
        lane = lax.broadcasted_iota(jnp.int32, (Bp, G), 1)
        fwd_lane = (lane % TWO_H) < H

        def lstm_pass(whh_ref, store_outputs, h0, c0):
            whh_bf = whh_ref[...]  # hoisted: (2H, G) bf16, loop-invariant

            def step(t, carry):
                h, c = carry
                tb = T - 1 - t
                rf = pl.multiple_of(t * Bp, Bp)   # forward rows (time t), sublane-aligned
                rb = pl.multiple_of(tb * Bp, Bp)  # backward rows (time T-1-t)
                # Forward gate pre-activations come from time t, backward from time T-1-t.
                pre = jnp.where(fwd_lane,
                                gx_ref[pl.ds(rf, Bp), :],
                                gx_ref[pl.ds(rb, Bp), :])
                # Single block-diagonal recurrent matmul for both directions.
                gates = pre + jnp.dot(h.astype(jnp.bfloat16), whh_bf,
                                      preferred_element_type=jnp.float32)
                i_g = jax.nn.sigmoid(gates[:, 0 * TWO_H:1 * TWO_H])
                f_g = jax.nn.sigmoid(gates[:, 1 * TWO_H:2 * TWO_H])
                g_g = jnp.tanh(gates[:, 2 * TWO_H:3 * TWO_H])
                o_g = jax.nn.sigmoid(gates[:, 3 * TWO_H:4 * TWO_H])
                c_new = f_g * c + i_g * g_g              # packed [c_f | c_b]
                h_new = o_g * jnp.tanh(c_new)            # packed [h_f | h_b]
                if store_outputs:
                    y0f_ref[pl.ds(rf, Bp), :] = h_new[:, 0:H]
                    y0b_ref[pl.ds(rb, Bp), :] = h_new[:, H:TWO_H]
                return h_new, c_new

            return lax.fori_loop(0, T, step, (h0, c0), unroll=unroll)

        zeros = jnp.zeros((Bp, TWO_H), jnp.float32)

        # ---- Layer 0: hoisted input projection (one MXU matmul, both directions) ----
        gx_ref[...] = (jnp.dot(x_ref[...], w0_ih_ref[...],
                               preferred_element_type=jnp.float32) + b0_ref[...])
        lstm_pass(w0_hh_ref, True, zeros, zeros)

        # ---- Layer 1: hoisted input projection from VMEM-resident layer-0 outputs ----
        gx_ref[...] = (jnp.dot(y0f_ref[...].astype(jnp.bfloat16), w1_ih_f_ref[...],
                               preferred_element_type=jnp.float32)
                       + jnp.dot(y0b_ref[...].astype(jnp.bfloat16), w1_ih_b_ref[...],
                                 preferred_element_type=jnp.float32)
                       + b1_ref[...])
        h1, _ = lstm_pass(w1_hh_ref, False, zeros, zeros)

        # ---- Fused fc head: cat(h1_fwd, h1_bwd) @ W_fc + b  (VPU mul + lane reduce) ----
        out_ref[...] = (jnp.sum(h1 * fcw_ref[...], axis=-1, keepdims=True)
                        + fcb_ref[...])

    return kernel


# ----------------------------------------------------------------------------
# Weight packing helpers (interleaved-per-gate combined layout).
#   column index = gate*2H + direction*H + j,  gate order [i, f, g, o], direction 0=fwd, 1=bwd
# ----------------------------------------------------------------------------
def _pack_gate_cols(w_f, w_b, H):
    # w_f, w_b: (in_dim, 4H) with PyTorch gate order [i, f, g, o] along the last axis.
    blocks = []
    for k in range(4):
        blocks.append(w_f[:, k * H:(k + 1) * H])
        blocks.append(w_b[:, k * H:(k + 1) * H])
    return jnp.concatenate(blocks, axis=-1)  # (in_dim, 8H)


def _pack_hh(whh_f, whh_b, H):
    # whh_f, whh_b: (H, 4H). Returns (2H, 8H) block-diagonal by direction.
    z = jnp.zeros_like(whh_f)
    top = _pack_gate_cols(whh_f, z, H)  # rows for h_fwd features
    bot = _pack_gate_cols(z, whh_b, H)  # rows for h_bwd features
    return jnp.concatenate([top, bot], axis=0)


# ----------------------------------------------------------------------------
# Parameter construction (deterministic, PyTorch-style uniform init).
# ----------------------------------------------------------------------------
def init_params(key, vocab_size, embedding_dim, hidden_dim):
    H = hidden_dim
    E = embedding_dim
    bound = 1.0 / (H ** 0.5)
    keys = iter(jax.random.split(key, 64))

    def unif(shape):
        return jax.random.uniform(next(keys), shape, jnp.float32, -bound, bound)

    def lstm_dir(in_dim):
        w_ih = unif((in_dim, 4 * H))                   # pre-transposed (in, 4H), gates [i,f,g,o]
        w_hh = unif((H, 4 * H))
        b = unif((1, 4 * H)) + unif((1, 4 * H))        # b_ih + b_hh combined
        return w_ih, w_hh, b

    # Layer 0 (input dim = E): forward / backward directions.
    w0f_ih, w0f_hh, b0f = lstm_dir(E)
    w0b_ih, w0b_hh, b0b = lstm_dir(E)
    # Layer 1 (input dim = 2H, rows ordered [from fwd features ; from bwd features]).
    w1f_ih, w1f_hh, b1f = lstm_dir(2 * H)
    w1b_ih, w1b_hh, b1b = lstm_dir(2 * H)

    params = {
        "emb": jax.random.normal(next(keys), (vocab_size, E), jnp.float32).astype(jnp.bfloat16),
        "w0_ih": _pack_gate_cols(w0f_ih, w0b_ih, H).astype(jnp.bfloat16),          # (E, 8H)
        "w0_hh": _pack_hh(w0f_hh, w0b_hh, H).astype(jnp.bfloat16),                 # (2H, 8H)
        "b0": _pack_gate_cols(b0f, b0b, H),                                        # (1, 8H) f32
        "w1_ih_f": _pack_gate_cols(w1f_ih[:H], w1b_ih[:H], H).astype(jnp.bfloat16),  # (H, 8H)
        "w1_ih_b": _pack_gate_cols(w1f_ih[H:], w1b_ih[H:], H).astype(jnp.bfloat16),  # (H, 8H)
        "w1_hh": _pack_hh(w1f_hh, w1b_hh, H).astype(jnp.bfloat16),                 # (2H, 8H)
        "b1": _pack_gate_cols(b1f, b1b, H),                                        # (1, 8H) f32
    }
    fc_bound = 1.0 / ((2 * H) ** 0.5)
    params["fcw"] = jax.random.uniform(next(keys), (1, 2 * H), jnp.float32, -fc_bound, fc_bound)
    params["fcb"] = jax.random.uniform(next(keys), (1, 1), jnp.float32, -fc_bound, fc_bound)
    return params


# ----------------------------------------------------------------------------
# Full forward pass (matches RNN.forward with the intended cat([h[-2], h[-1]])).
# ----------------------------------------------------------------------------
@jax.jit
def rnn_forward(x_tokens, params):
    T, B = x_tokens.shape
    E = params["w0_ih"].shape[0]
    H = params["w0_hh"].shape[0] // 2
    G = 8 * H
    Bp = max(8, -(-B // 8) * 8)               # pad batch to the f32 sublane width

    # Embedding lookup in bf16 (dropout = identity, eval semantics).
    emb = jnp.take(params["emb"], x_tokens, axis=0)            # (T, B, E) bf16
    if Bp != B:
        emb = jnp.pad(emb, ((0, 0), (0, Bp - B), (0, 0)))
    x2d = emb.reshape(T * Bp, E)

    unroll = T if T <= 8 else 4
    kernel = _make_fused_rnn_kernel(T, Bp, H, unroll)
    vmem = pl.BlockSpec(memory_space=pltpu.MemorySpace.VMEM)

    # Explicit scoped-VMEM budget (inputs + weights + scratch, doubled, + margin).
    weight_bytes = sum(int(v.size) * jnp.dtype(v.dtype).itemsize
                       for k, v in params.items() if k != "emb")
    scratch_bytes = T * Bp * G * 4 + 2 * T * Bp * H * 4
    io_bytes = T * Bp * E * 2 + Bp * 4
    vmem_limit = int(min(max(2 * (weight_bytes + scratch_bytes + io_bytes) + (2 << 20),
                             8 << 20), 48 << 20))

    out = pl.pallas_call(
        kernel,
        out_shape=jax.ShapeDtypeStruct((Bp, 1), jnp.float32),
        in_specs=[vmem] * 10,
        out_specs=vmem,
        scratch_shapes=[pltpu.VMEM((T * Bp, G), jnp.float32),   # gx (reused across layers)
                        pltpu.VMEM((T * Bp, H), jnp.float32),   # layer-0 fwd outputs
                        pltpu.VMEM((T * Bp, H), jnp.float32)],  # layer-0 bwd outputs
        compiler_params=pltpu.CompilerParams(vmem_limit_bytes=vmem_limit),
    )(x2d,
      params["w0_ih"], params["w0_hh"], params["b0"],
      params["w1_ih_f"], params["w1_ih_b"], params["w1_hh"], params["b1"],
      params["fcw"], params["fcb"])

    return out[:B]


if __name__ == "__main__":
    vocab_size = 100
    embedding_dim = 32
    hidden_dim = 32
    seq_len = 8
    batch = 2

    key = jax.random.PRNGKey(0)
    pkey, xkey = jax.random.split(key)
    params = init_params(pkey, vocab_size, embedding_dim, hidden_dim)

    x_tokens = jax.random.randint(xkey, (seq_len, batch), 0, vocab_size, dtype=jnp.int32)

    out = rnn_forward(x_tokens, params)
    out = jax.block_until_ready(out)
    assert out.shape == (batch, 1), out.shape
    print("KERNEL_OK")
</pallas_src>

<mosaic_0001>
module attributes {stable_mosaic.version = 11 : i64} {
  func.func @kernel(%arg0: memref<64x32xbf16, #tpu.memory_space<vmem>>, %arg1: memref<32x256xbf16, #tpu.memory_space<vmem>>, %arg2: memref<64x256xbf16, #tpu.memory_space<vmem>>, %arg3: memref<1x256xf32, #tpu.memory_space<vmem>>, %arg4: memref<32x256xbf16, #tpu.memory_space<vmem>>, %arg5: memref<32x256xbf16, #tpu.memory_space<vmem>>, %arg6: memref<64x256xbf16, #tpu.memory_space<vmem>>, %arg7: memref<1x256xf32, #tpu.memory_space<vmem>>, %arg8: memref<1x64xf32, #tpu.memory_space<vmem>>, %arg9: memref<1x1xf32, #tpu.memory_space<vmem>>, %arg10: memref<8x1xf32, #tpu.memory_space<vmem>>, %arg11: memref<64x256xf32, #tpu.memory_space<vmem>>, %arg12: memref<64x32xf32, #tpu.memory_space<vmem>>, %arg13: memref<64x32xf32, #tpu.memory_space<vmem>>) attributes {dimension_semantics = [], scalar_prefetch = 0 : i64, scratch_operands = 3 : i64, tpu.core_type = #tpu.core_type<tc>} {
    %0 = tpu.iota {dimensions = array<i32: 1>} : vector<8x256xi32>
    %c64_i32 = arith.constant 64 : i32
    %c0_i32 = arith.constant 0 : i32
    %1 = arith.cmpi eq, %c64_i32, %c0_i32 : i32
    %c1_i32 = arith.constant 1 : i32
    %2 = arith.select %1, %c1_i32, %c64_i32 : i32
    %3 = vector.broadcast %2 : i32 to vector<8x256xi32>
    %4 = arith.remsi %0, %3 : vector<8x256xi32>
    %c0_i32_0 = arith.constant 0 : i32
    %5 = vector.broadcast %c0_i32_0 : i32 to vector<8x256xi32>
    %6 = arith.cmpi ne, %4, %5 : vector<8x256xi32>
    %c0_i32_1 = arith.constant 0 : i32
    %7 = vector.broadcast %c0_i32_1 : i32 to vector<8x256xi32>
    %8 = arith.cmpi slt, %4, %7 : vector<8x256xi32>
    %c0_i32_2 = arith.constant 0 : i32
    %9 = arith.cmpi slt, %2, %c0_i32_2 : i32
    %10 = vector.broadcast %9 : i1 to vector<8x256xi1>
    %11 = vector.broadcast %10 : vector<8x256xi1> to vector<8x256xi1>
    %12 = arith.xori %8, %11 : vector<8x256xi1>
    %13 = arith.andi %12, %6 : vector<8x256xi1>
    %14 = vector.broadcast %2 : i32 to vector<8x256xi32>
    %15 = arith.addi %4, %14 : vector<8x256xi32>
    %16 = arith.select %13, %15, %4 : vector<8x256xi1>, vector<8x256xi32>
    %c32_i32 = arith.constant 32 : i32
    %17 = vector.broadcast %c32_i32 : i32 to vector<8x256xi32>
    %18 = arith.cmpi slt, %16, %17 : vector<8x256xi32>
    %cst = arith.constant 0.000000e+00 : f32
    %19 = vector.broadcast %cst : f32 to vector<8x64xf32>
    %c0 = arith.constant 0 : index
    %c0_3 = arith.constant 0 : index
    %20 = vector.load %arg0[%c0, %c0_3] : memref<64x32xbf16, #tpu.memory_space<vmem>>, vector<64x32xbf16>
    %c0_4 = arith.constant 0 : index
    %c0_5 = arith.constant 0 : index
    %21 = vector.load %arg1[%c0_4, %c0_5] : memref<32x256xbf16, #tpu.memory_space<vmem>>, vector<32x256xbf16>
    %cst_6 = arith.constant dense<0.000000e+00> : vector<64x256xf32>
    %22 = tpu.matmul %20, %21, %cst_6 {dimension_numbers = #tpu.dot_dimension_numbers<[1], [0], [0], [1], [0, 0, 1, 1], [], []>} : vector<64x32xbf16>, vector<32x256xbf16>, vector<64x256xf32> -> vector<64x256xf32>
    %c0_7 = arith.constant 0 : index
    %c0_8 = arith.constant 0 : index
    %23 = vector.load %arg3[%c0_7, %c0_8] : memref<1x256xf32, #tpu.memory_space<vmem>>, vector<1x256xf32>
    %24 = vector.broadcast %23 : vector<1x256xf32> to vector<64x256xf32>
    %25 = arith.addf %22, %24 : vector<64x256xf32>
    %c0_9 = arith.constant 0 : index
    %c0_10 = arith.constant 0 : index
    %26 = vector.load %arg11[%c0_9, %c0_10] : memref<64x256xf32, #tpu.memory_space<vmem>>, vector<64x256xf32>
    tpu.vector_store %arg11[%c0_9, %c0_10], %25 {strides = array<i32>} : memref<64x256xf32, #tpu.memory_space<vmem>>, vector<64x256xf32>,
    %c0_11 = arith.constant 0 : index
    %c0_12 = arith.constant 0 : index
    %27 = vector.load %arg2[%c0_11, %c0_12] : memref<64x256xbf16, #tpu.memory_space<vmem>>, vector<64x256xbf16>
    %c0_i32_13 = arith.constant 0 : i32
    %c7_i32 = arith.constant 7 : i32
    %28 = arith.subi %c7_i32, %c0_i32_13 : i32
    %c8_i32 = arith.constant 8 : i32
    %29 = arith.muli %c0_i32_13, %c8_i32 : i32
    %30 = tpu.assume_multiple %29, 8 : i32
    %c8_i32_14 = arith.constant 8 : i32
    %31 = arith.muli %28, %c8_i32_14 : i32
    %32 = tpu.assume_multiple %31, 8 : i32
    %33 = arith.index_cast %30 : i32 to index
    %c0_15 = arith.constant 0 : index
    %34 = vector.load %arg11[%33, %c0_15] : memref<64x256xf32, #tpu.memory_space<vmem>>, vector<8x256xf32>
    %35 = arith.index_cast %32 : i32 to index
    %c0_16 = arith.constant 0 : index
    %36 = vector.load %arg11[%35, %c0_16] : memref<64x256xf32, #tpu.memory_space<vmem>>, vector<8x256xf32>
    %37 = arith.select %18, %34, %36 : vector<8x256xi1>, vector<8x256xf32>
    %38 = arith.truncf %19 : vector<8x64xf32> to vector<8x64xbf16>
    %cst_17 = arith.constant dense<0.000000e+00> : vector<8x256xf32>
    %39 = tpu.matmul %38, %27, %cst_17 {dimension_numbers = #tpu.dot_dimension_numbers<[1], [0], [0], [1], [0, 0, 1, 1], [], []>} : vector<8x64xbf16>, vector<64x256xbf16>, vector<8x256xf32> -> vector<8x256xf32>
    %40 = arith.addf %37, %39 : vector<8x256xf32>
    %41 = vector.extract_strided_slice %40 {offsets = [0, 0], sizes = [8, 64], strides = [1, 1]} : vector<8x256xf32> to vector<8x64xf32>
    %42 = arith.negf %41 : vector<8x64xf32>
    %43 = math.exp %42 : vector<8x64xf32>
    %cst_18 = arith.constant 1.000000e+00 : f32
    %44 = vector.broadcast %cst_18 : f32 to vector<8x64xf32>
    %45 = arith.addf %44, %43 : vector<8x64xf32>
    %46 = arith.divf %44, %45 : vector<8x64xf32>
    %47 = vector.extract_strided_slice %40 {offsets = [0, 64], sizes = [8, 64], strides = [1, 1]} : vector<8x256xf32> to vector<8x64xf32>
    %48 = arith.negf %47 : vector<8x64xf32>
    %49 = math.exp %48 : vector<8x64xf32>
    %cst_19 = arith.constant 1.000000e+00 : f32
    %50 = vector.broadcast %cst_19 : f32 to vector<8x64xf32>
    %51 = arith.addf %50, %49 : vector<8x64xf32>
    %52 = arith.divf %50, %51 : vector<8x64xf32>
    %53 = vector.extract_strided_slice %40 {offsets = [0, 128], sizes = [8, 64], strides = [1, 1]} : vector<8x256xf32> to vector<8x64xf32>
    %54 = math.tanh %53 : vector<8x64xf32>
    %55 = vector.extract_strided_slice %40 {offsets = [0, 192], sizes = [8, 64], strides = [1, 1]} : vector<8x256xf32> to vector<8x64xf32>
    %56 = arith.negf %55 : vector<8x64xf32>
    %57 = math.exp %56 : vector<8x64xf32>
    %cst_20 = arith.constant 1.000000e+00 : f32
    %58 = vector.broadcast %cst_20 : f32 to vector<8x64xf32>
    %59 = arith.addf %58, %57 : vector<8x64xf32>
    %60 = arith.divf %58, %59 : vector<8x64xf32>
    %61 = arith.mulf %52, %19 : vector<8x64xf32>
    %62 = arith.mulf %46, %54 : vector<8x64xf32>
    %63 = arith.addf %61, %62 : vector<8x64xf32>
    %64 = math.tanh %63 : vector<8x64xf32>
    %65 = arith.mulf %60, %64 : vector<8x64xf32>
    %66 = vector.extract_strided_slice %65 {offsets = [0, 0], sizes = [8, 32], strides = [1, 1]} : vector<8x64xf32> to vector<8x32xf32>
    %67 = arith.index_cast %30 : i32 to index
    %c0_21 = arith.constant 0 : index
    %68 = vector.load %arg12[%67, %c0_21] : memref<64x32xf32, #tpu.memory_space<vmem>>, vector<8x32xf32>
    tpu.vector_store %arg12[%67, %c0_21], %66 {strides = array<i32>} : memref<64x32xf32, #tpu.memory_space<vmem>>, vector<8x32xf32>,
    %69 = vector.extract_strided_slice %65 {offsets = [0, 32], sizes = [8, 32], strides = [1, 1]} : vector<8x64xf32> to vector<8x32xf32>
    %70 = arith.index_cast %32 : i32 to index
    %c0_22 = arith.constant 0 : index
    %71 = vector.load %arg13[%70, %c0_22] : memref<64x32xf32, #tpu.memory_space<vmem>>, vector<8x32xf32>
    tpu.vector_store %arg13[%70, %c0_22], %69 {strides = array<i32>} : memref<64x32xf32, #tpu.memory_space<vmem>>, vector<8x32xf32>,
    %c1_i32_23 = arith.constant 1 : i32
    %c7_i32_24 = arith.constant 7 : i32
    %72 = arith.subi %c7_i32_24, %c1_i32_23 : i32
    %c8_i32_25 = arith.constant 8 : i32
    %73 = arith.muli %c1_i32_23, %c8_i32_25 : i32
    %74 = tpu.assume_multiple %73, 8 : i32
    %c8_i32_26 = arith.constant 8 : i32
    %75 = arith.muli %72, %c8_i32_26 : i32
    %76 = tpu.assume_multiple %75, 8 : i32
    %77 = arith.index_cast %74 : i32 to index
    %c0_27 = arith.constant 0 : index
    %78 = vector.load %arg11[%77, %c0_27] : memref<64x256xf32, #tpu.memory_space<vmem>>, vector<8x256xf32>
    %79 = arith.index_cast %76 : i32 to index
    %c0_28 = arith.constant 0 : index
    %80 = vector.load %arg11[%79, %c0_28] : memref<64x256xf32, #tpu.memory_space<vmem>>, vector<8x256xf32>
    %81 = arith.select %18, %78, %80 : vector<8x256xi1>, vector<8x256xf32>
    %82 = arith.truncf %65 : vector<8x64xf32> to vector<8x64xbf16>
    %cst_29 = arith.constant dense<0.000000e+00> : vector<8x256xf32>
    %83 = tpu.matmul %82, %27, %cst_29 {dimension_numbers = #tpu.dot_dimension_numbers<[1], [0], [0], [1], [0, 0, 1, 1], [], []>} : vector<8x64xbf16>, vector<64x256xbf16>, vector<8x256xf32> -> vector<8x256xf32>
    %84 = arith.addf %81, %83 : vector<8x256xf32>
    %85 = vector.extract_strided_slice %84 {offsets = [0, 0], sizes = [8, 64], strides = [1, 1]} : vector<8x256xf32> to vector<8x64xf32>
    %86 = arith.negf %85 : vector<8x64xf32>
    %87 = math.exp %86 : vector<8x64xf32>
    %cst_30 = arith.constant 1.000000e+00 : f32
    %88 = vector.broadcast %cst_30 : f32 to vector<8x64xf32>
    %89 = arith.addf %88, %87 : vector<8x64xf32>
    %90 = arith.divf %88, %89 : vector<8x64xf32>
    %91 = vector.extract_strided_slice %84 {offsets = [0, 64], sizes = [8, 64], strides = [1, 1]} : vector<8x256xf32> to vector<8x64xf32>
    %92 = arith.negf %91 : vector<8x64xf32>
    %93 = math.exp %92 : vector<8x64xf32>
    %cst_31 = arith.constant 1.000000e+00 : f32
    %94 = vector.broadcast %cst_31 : f32 to vector<8x64xf32>
    %95 = arith.addf %94, %93 : vector<8x64xf32>
    %96 = arith.divf %94, %95 : vector<8x64xf32>
    %97 = vector.extract_strided_slice %84 {offsets = [0, 128], sizes = [8, 64], strides = [1, 1]} : vector<8x256xf32> to vector<8x64xf32>
    %98 = math.tanh %97 : vector<8x64xf32>
    %99 = vector.extract_strided_slice %84 {offsets = [0, 192], sizes = [8, 64], strides = [1, 1]} : vector<8x256xf32> to vector<8x64xf32>
    %100 = arith.negf %99 : vector<8x64xf32>
    %101 = math.exp %100 : vector<8x64xf32>
    %cst_32 = arith.constant 1.000000e+00 : f32
    %102 = vector.broadcast %cst_32 : f32 to vector<8x64xf32>
    %103 = arith.addf %102, %101 : vector<8x64xf32>
    %104 = arith.divf %102, %103 : vector<8x64xf32>
    %105 = arith.mulf %96, %63 : vector<8x64xf32>
    %106 = arith.mulf %90, %98 : vector<8x64xf32>
    %107 = arith.addf %105, %106 : vector<8x64xf32>
    %108 = math.tanh %107 : vector<8x64xf32>
    %109 = arith.mulf %104, %108 : vector<8x64xf32>
    %110 = vector.extract_strided_slice %109 {offsets = [0, 0], sizes = [8, 32], strides = [1, 1]} : vector<8x64xf32> to vector<8x32xf32>
    %111 = arith.index_cast %74 : i32 to index
    %c0_33 = arith.constant 0 : index
    %112 = vector.load %arg12[%111, %c0_33] : memref<64x32xf32, #tpu.memory_space<vmem>>, vector<8x32xf32>
    tpu.vector_store %arg12[%111, %c0_33], %110 {strides = array<i32>} : memref<64x32xf32, #tpu.memory_space<vmem>>, vector<8x32xf32>,
    %113 = vector.extract_strided_slice %109 {offsets = [0, 32], sizes = [8, 32], strides = [1, 1]} : vector<8x64xf32> to vector<8x32xf32>
    %114 = arith.index_cast %76 : i32 to index
    %c0_34 = arith.constant 0 : index
    %115 = vector.load %arg13[%114, %c0_34] : memref<64x32xf32, #tpu.memory_space<vmem>>, vector<8x32xf32>
    tpu.vector_store %arg13[%114, %c0_34], %113 {strides = array<i32>} : memref<64x32xf32, #tpu.memory_space<vmem>>, vector<8x32xf32>,
    %c2_i32 = arith.constant 2 : i32
    %c7_i32_35 = arith.constant 7 : i32
    %116 = arith.subi %c7_i32_35, %c2_i32 : i32
    %c8_i32_36 = arith.constant 8 : i32
    %117 = arith.muli %c2_i32, %c8_i32_36 : i32
    %118 = tpu.assume_multiple %117, 8 : i32
    %c8_i32_37 = arith.constant 8 : i32
    %119 = arith.muli %116, %c8_i32_37 : i32
    %120 = tpu.assume_multiple %119, 8 : i32
    %121 = arith.index_cast %118 : i32 to index
    %c0_38 = arith.constant 0 : index
    %122 = vector.load %arg11[%121, %c0_38] : memref<64x256xf32, #tpu.memory_space<vmem>>, vector<8x256xf32>
    %123 = arith.index_cast %120 : i32 to index
    %c0_39 = arith.constant 0 : index
    %124 = vector.load %arg11[%123, %c0_39] : memref<64x256xf32, #tpu.memory_space<vmem>>, vector<8x256xf32>
    %125 = arith.select %18, %122, %124 : vector<8x256xi1>, vector<8x256xf32>
    %126 = arith.truncf %109 : vector<8x64xf32> to vector<8x64xbf16>
    %cst_40 = arith.constant dense<0.000000e+00> : vector<8x256xf32>
    %127 = tpu.matmul %126, %27, %cst_40 {dimension_numbers = #tpu.dot_dimension_numbers<[1], [0], [0], [1], [0, 0, 1, 1], [], []>} : vector<8x64xbf16>, vector<64x256xbf16>, vector<8x256xf32> -> vector<8x256xf32>
    %128 = arith.addf %125, %127 : vector<8x256xf32>
    %129 = vector.extract_strided_slice %128 {offsets = [0, 0], sizes = [8, 64], strides = [1, 1]} : vector<8x256xf32> to vector<8x64xf32>
    %130 = arith.negf %129 : vector<8x64xf32>
    %131 = math.exp %130 : vector<8x64xf32>
    %cst_41 = arith.constant 1.000000e+00 : f32
    %132 = vector.broadcast %cst_41 : f32 to vector<8x64xf32>
    %133 = arith.addf %132, %131 : vector<8x64xf32>
    %134 = arith.divf %132, %133 : vector<8x64xf32>
    %135 = vector.extract_strided_slice %128 {offsets = [0, 64], sizes = [8, 64], strides = [1, 1]} : vector<8x256xf32> to vector<8x64xf32>
    %136 = arith.negf %135 : vector<8x64xf32>
    %137 = math.exp %136 : vector<8x64xf32>
    %cst_42 = arith.constant 1.000000e+00 : f32
    %138 = vector.broadcast %cst_42 : f32 to vector<8x64xf32>
    %139 = arith.addf %138, %137 : vector<8x64xf32>
    %140 = arith.divf %138, %139 : vector<8x64xf32>
    %141 = vector.extract_strided_slice %128 {offsets = [0, 128], sizes = [8, 64], strides = [1, 1]} : vector<8x256xf32> to vector<8x64xf32>
    %142 = math.tanh %141 : vector<8x64xf32>
    %143 = vector.extract_strided_slice %128 {offsets = [0, 192], sizes = [8, 64], strides = [1, 1]} : vector<8x256xf32> to vector<8x64xf32>
    %144 = arith.negf %143 : vector<8x64xf32>
    %145 = math.exp %144 : vector<8x64xf32>
    %cst_43 = arith.constant 1.000000e+00 : f32
    %146 = vector.broadcast %cst_43 : f32 to vector<8x64xf32>
    %147 = arith.addf %146, %145 : vector<8x64xf32>
    %148 = arith.divf %146, %147 : vector<8x64xf32>
    %149 = arith.mulf %140, %107 : vector<8x64xf32>
    %150 = arith.mulf %134, %142 : vector<8x64xf32>
    %151 = arith.addf %149, %150 : vector<8x64xf32>
    %152 = math.tanh %151 : vector<8x64xf32>
    %153 = arith.mulf %148, %152 : vector<8x64xf32>
    %154 = vector.extract_strided_slice %153 {offsets = [0, 0], sizes = [8, 32], strides = [1, 1]} : vector<8x64xf32> to vector<8x32xf32>
    %155 = arith.index_cast %118 : i32 to index
    %c0_44 = arith.constant 0 : index
    %156 = vector.load %arg12[%155, %c0_44] : memref<64x32xf32, #tpu.memory_space<vmem>>, vector<8x32xf32>
    tpu.vector_store %arg12[%155, %c0_44], %154 {strides = array<i32>} : memref<64x32xf32, #tpu.memory_space<vmem>>, vector<8x32xf32>,
    %157 = vector.extract_strided_slice %153 {offsets = [0, 32], sizes = [8, 32], strides = [1, 1]} : vector<8x64xf32> to vector<8x32xf32>
    %158 = arith.index_cast %120 : i32 to index
    %c0_45 = arith.constant 0 : index
    %159 = vector.load %arg13[%158, %c0_45] : memref<64x32xf32, #tpu.memory_space<vmem>>, vector<8x32xf32>
    tpu.vector_store %arg13[%158, %c0_45], %157 {strides = array<i32>} : memref<64x32xf32, #tpu.memory_space<vmem>>, vector<8x32xf32>,
    %c3_i32 = arith.constant 3 : i32
    %c7_i32_46 = arith.constant 7 : i32
    %160 = arith.subi %c7_i32_46, %c3_i32 : i32
    %c8_i32_47 = arith.constant 8 : i32
    %161 = arith.muli %c3_i32, %c8_i32_47 : i32
    %162 = tpu.assume_multiple %161, 8 : i32
    %c8_i32_48 = arith.constant 8 : i32
    %163 = arith.muli %160, %c8_i32_48 : i32
    %164 = tpu.assume_multiple %163, 8 : i32
    %165 = arith.index_cast %162 : i32 to index
    %c0_49 = arith.constant 0 : index
    %166 = vector.load %arg11[%165, %c0_49] : memref<64x256xf32, #tpu.memory_space<vmem>>, vector<8x256xf32>
    %167 = arith.index_cast %164 : i32 to index
    %c0_50 = arith.constant 0 : index
    %168 = vector.load %arg11[%167, %c0_50] : memref<64x256xf32, #tpu.memory_space<vmem>>, vector<8x256xf32>
    %169 = arith.select %18, %166, %168 : vector<8x256xi1>, vector<8x256xf32>
    %170 = arith.truncf %153 : vector<8x64xf32> to vector<8x64xbf16>
    %cst_51 = arith.constant dense<0.000000e+00> : vector<8x256xf32>
    %171 = tpu.matmul %170, %27, %cst_51 {dimension_numbers = #tpu.dot_dimension_numbers<[1], [0], [0], [1], [0, 0, 1, 1], [], []>} : vector<8x64xbf16>, vector<64x256xbf16>, vector<8x256xf32> -> vector<8x256xf32>
    %172 = arith.addf %169, %171 : vector<8x256xf32>
    %173 = vector.extract_strided_slice %172 {offsets = [0, 0], sizes = [8, 64], strides = [1, 1]} : vector<8x256xf32> to vector<8x64xf32>
    %174 = arith.negf %173 : vector<8x64xf32>
    %175 = math.exp %174 : vector<8x64xf32>
    %cst_52 = arith.constant 1.000000e+00 : f32
    %176 = vector.broadcast %cst_52 : f32 to vector<8x64xf32>
    %177 = arith.addf %176, %175 : vector<8x64xf32>
    %178 = arith.divf %176, %177 : vector<8x64xf32>
    %179 = vector.extract_strided_slice %172 {offsets = [0, 64], sizes = [8, 64], strides = [1, 1]} : vector<8x256xf32> to vector<8x64xf32>
    %180 = arith.negf %179 : vector<8x64xf32>
    %181 = math.exp %180 : vector<8x64xf32>
    %cst_53 = arith.constant 1.000000e+00 : f32
    %182 = vector.broadcast %cst_53 : f32 to vector<8x64xf32>
    %183 = arith.addf %182, %181 : vector<8x64xf32>
    %184 = arith.divf %182, %183 : vector<8x64xf32>
    %185 = vector.extract_strided_slice %172 {offsets = [0, 128], sizes = [8, 64], strides = [1, 1]} : vector<8x256xf32> to vector<8x64xf32>
    %186 = math.tanh %185 : vector<8x64xf32>
    %187 = vector.extract_strided_slice %172 {offsets = [0, 192], sizes = [8, 64], strides = [1, 1]} : vector<8x256xf32> to vector<8x64xf32>
    %188 = arith.negf %187 : vector<8x64xf32>
    %189 = math.exp %188 : vector<8x64xf32>
    %cst_54 = arith.constant 1.000000e+00 : f32
    %190 = vector.broadcast %cst_54 : f32 to vector<8x64xf32>
    %191 = arith.addf %190, %189 : vector<8x64xf32>
    %192 = arith.divf %190, %191 : vector<8x64xf32>
    %193 = arith.mulf %184, %151 : vector<8x64xf32>
    %194 = arith.mulf %178, %186 : vector<8x64xf32>
    %195 = arith.addf %193, %194 : vector<8x64xf32>
    %196 = math.tanh %195 : vector<8x64xf32>
    %197 = arith.mulf %192, %196 : vector<8x64xf32>
    %198 = vector.extract_strided_slice %197 {offsets = [0, 0], sizes = [8, 32], strides = [1, 1]} : vector<8x64xf32> to vector<8x32xf32>
    %199 = arith.index_cast %162 : i32 to index
    %c0_55 = arith.constant 0 : index
    %200 = vector.load %arg12[%199, %c0_55] : memref<64x32xf32, #tpu.memory_space<vmem>>, vector<8x32xf32>
    tpu.vector_store %arg12[%199, %c0_55], %198 {strides = array<i32>} : memref<64x32xf32, #tpu.memory_space<vmem>>, vector<8x32xf32>,
    %201 = vector.extract_strided_slice %197 {offsets = [0, 32], sizes = [8, 32], strides = [1, 1]} : vector<8x64xf32> to vector<8x32xf32>
    %202 = arith.index_cast %164 : i32 to index
    %c0_56 = arith.constant 0 : index
    %203 = vector.load %arg13[%202, %c0_56] : memref<64x32xf32, #tpu.memory_space<vmem>>, vector<8x32xf32>
    tpu.vector_store %arg13[%202, %c0_56], %201 {strides = array<i32>} : memref<64x32xf32, #tpu.memory_space<vmem>>, vector<8x32xf32>,
    %c4_i32 = arith.constant 4 : i32
    %c7_i32_57 = arith.constant 7 : i32
    %204 = arith.subi %c7_i32_57, %c4_i32 : i32
    %c8_i32_58 = arith.constant 8 : i32
    %205 = arith.muli %c4_i32, %c8_i32_58 : i32
    %206 = tpu.assume_multiple %205, 8 : i32
    %c8_i32_59 = arith.constant 8 : i32
    %207 = arith.muli %204, %c8_i32_59 : i32
    %208 = tpu.assume_multiple %207, 8 : i32
    %209 = arith.index_cast %206 : i32 to index
    %c0_60 = arith.constant 0 : index
    %210 = vector.load %arg11[%209, %c0_60] : memref<64x256xf32, #tpu.memory_space<vmem>>, vector<8x256xf32>
    %211 = arith.index_cast %208 : i32 to index
    %c0_61 = arith.constant 0 : index
    %212 = vector.load %arg11[%211, %c0_61] : memref<64x256xf32, #tpu.memory_space<vmem>>, vector<8x256xf32>
    %213 = arith.select %18, %210, %212 : vector<8x256xi1>, vector<8x256xf32>
    %214 = arith.truncf %197 : vector<8x64xf32> to vector<8x64xbf16>
    %cst_62 = arith.constant dense<0.000000e+00> : vector<8x256xf32>
    %215 = tpu.matmul %214, %27, %cst_62 {dimension_numbers = #tpu.dot_dimension_numbers<[1], [0], [0], [1], [0, 0, 1, 1], [], []>} : vector<8x64xbf16>, vector<64x256xbf16>, vector<8x256xf32> -> vector<8x256xf32>
    %216 = arith.addf %213, %215 : vector<8x256xf32>
    %217 = vector.extract_strided_slice %216 {offsets = [0, 0], sizes = [8, 64], strides = [1, 1]} : vector<8x256xf32> to vector<8x64xf32>
    %218 = arith.negf %217 : vector<8x64xf32>
    %219 = math.exp %218 : vector<8x64xf32>
    %cst_63 = arith.constant 1.000000e+00 : f32
    %220 = vector.broadcast %cst_63 : f32 to vector<8x64xf32>
    %221 = arith.addf %220, %219 : vector<8x64xf32>
    %222 = arith.divf %220, %221 : vector<8x64xf32>
    %223 = vector.extract_strided_slice %216 {offsets = [0, 64], sizes = [8, 64], strides = [1, 1]} : vector<8x256xf32> to vector<8x64xf32>
    %224 = arith.negf %223 : vector<8x64xf32>
    %225 = math.exp %224 : vector<8x64xf32>
    %cst_64 = arith.constant 1.000000e+00 : f32
    %226 = vector.broadcast %cst_64 : f32 to vector<8x64xf32>
    %227 = arith.addf %226, %225 : vector<8x64xf32>
    %228 = arith.divf %226, %227 : vector<8x64xf32>
    %229 = vector.extract_strided_slice %216 {offsets = [0, 128], sizes = [8, 64], strides = [1, 1]} : vector<8x256xf32> to vector<8x64xf32>
    %230 = math.tanh %229 : vector<8x64xf32>
    %231 = vector.extract_strided_slice %216 {offsets = [0, 192], sizes = [8, 64], strides = [1, 1]} : vector<8x256xf32> to vector<8x64xf32>
    %232 = arith.negf %231 : vector<8x64xf32>
    %233 = math.exp %232 : vector<8x64xf32>
    %cst_65 = arith.constant 1.000000e+00 : f32
    %234 = vector.broadcast %cst_65 : f32 to vector<8x64xf32>
    %235 = arith.addf %234, %233 : vector<8x64xf32>
    %236 = arith.divf %234, %235 : vector<8x64xf32>
    %237 = arith.mulf %228, %195 : vector<8x64xf32>
    %238 = arith.mulf %222, %230 : vector<8x64xf32>
    %239 = arith.addf %237, %238 : vector<8x64xf32>
    %240 = math.tanh %239 : vector<8x64xf32>
    %241 = arith.mulf %236, %240 : vector<8x64xf32>
    %242 = vector.extract_strided_slice %241 {offsets = [0, 0], sizes = [8, 32], strides = [1, 1]} : vector<8x64xf32> to vector<8x32xf32>
    %243 = arith.index_cast %206 : i32 to index
    %c0_66 = arith.constant 0 : index
    %244 = vector.load %arg12[%243, %c0_66] : memref<64x32xf32, #tpu.memory_space<vmem>>, vector<8x32xf32>
    tpu.vector_store %arg12[%243, %c0_66], %242 {strides = array<i32>} : memref<64x32xf32, #tpu.memory_space<vmem>>, vector<8x32xf32>,
    %245 = vector.extract_strided_slice %241 {offsets = [0, 32], sizes = [8, 32], strides = [1, 1]} : vector<8x64xf32> to vector<8x32xf32>
    %246 = arith.index_cast %208 : i32 to index
    %c0_67 = arith.constant 0 : index
    %247 = vector.load %arg13[%246, %c0_67] : memref<64x32xf32, #tpu.memory_space<vmem>>, vector<8x32xf32>
    tpu.vector_store %arg13[%246, %c0_67], %245 {strides = array<i32>} : memref<64x32xf32, #tpu.memory_space<vmem>>, vector<8x32xf32>,
    %c5_i32 = arith.constant 5 : i32
    %c7_i32_68 = arith.constant 7 : i32
    %248 = arith.subi %c7_i32_68, %c5_i32 : i32
    %c8_i32_69 = arith.constant 8 : i32
    %249 = arith.muli %c5_i32, %c8_i32_69 : i32
    %250 = tpu.assume_multiple %249, 8 : i32
    %c8_i32_70 = arith.constant 8 : i32
    %251 = arith.muli %248, %c8_i32_70 : i32
    %252 = tpu.assume_multiple %251, 8 : i32
    %253 = arith.index_cast %250 : i32 to index
    %c0_71 = arith.constant 0 : index
    %254 = vector.load %arg11[%253, %c0_71] : memref<64x256xf32, #tpu.memory_space<vmem>>, vector<8x256xf32>
    %255 = arith.index_cast %252 : i32 to index
    %c0_72 = arith.constant 0 : index
    %256 = vector.load %arg11[%255, %c0_72] : memref<64x256xf32, #tpu.memory_space<vmem>>, vector<8x256xf32>
    %257 = arith.select %18, %254, %256 : vector<8x256xi1>, vector<8x256xf32>
    %258 = arith.truncf %241 : vector<8x64xf32> to vector<8x64xbf16>
    %cst_73 = arith.constant dense<0.000000e+00> : vector<8x256xf32>
    %259 = tpu.matmul %258, %27, %cst_73 {dimension_numbers = #tpu.dot_dimension_numbers<[1], [0], [0], [1], [0, 0, 1, 1], [], []>} : vector<8x64xbf16>, vector<64x256xbf16>, vector<8x256xf32> -> vector<8x256xf32>
    %260 = arith.addf %257, %259 : vector<8x256xf32>
    %261 = vector.extract_strided_slice %260 {offsets = [0, 0], sizes = [8, 64], strides = [1, 1]} : vector<8x256xf32> to vector<8x64xf32>
    %262 = arith.negf %261 : vector<8x64xf32>
    %263 = math.exp %262 : vector<8x64xf32>
    %cst_74 = arith.constant 1.000000e+00 : f32
    %264 = vector.broadcast %cst_74 : f32 to vector<8x64xf32>
    %265 = arith.addf %264, %263 : vector<8x64xf32>
    %266 = arith.divf %264, %265 : vector<8x64xf32>
    %267 = vector.extract_strided_slice %260 {offsets = [0, 64], sizes = [8, 64], strides = [1, 1]} : vector<8x256xf32> to vector<8x64xf32>
    %268 = arith.negf %267 : vector<8x64xf32>
    %269 = math.exp %268 : vector<8x64xf32>
    %cst_75 = arith.constant 1.000000e+00 : f32
    %270 = vector.broadcast %cst_75 : f32 to vector<8x64xf32>
    %271 = arith.addf %270, %269 : vector<8x64xf32>
    %272 = arith.divf %270, %271 : vector<8x64xf32>
    %273 = vector.extract_strided_slice %260 {offsets = [0, 128], sizes = [8, 64], strides = [1, 1]} : vector<8x256xf32> to vector<8x64xf32>
    %274 = math.tanh %273 : vector<8x64xf32>
    %275 = vector.extract_strided_slice %260 {offsets = [0, 192], sizes = [8, 64], strides = [1, 1]} : vector<8x256xf32> to vector<8x64xf32>
    %276 = arith.negf %275 : vector<8x64xf32>
    %277 = math.exp %276 : vector<8x64xf32>
    %cst_76 = arith.constant 1.000000e+00 : f32
    %278 = vector.broadcast %cst_76 : f32 to vector<8x64xf32>
    %279 = arith.addf %278, %277 : vector<8x64xf32>
    %280 = arith.divf %278, %279 : vector<8x64xf32>
    %281 = arith.mulf %272, %239 : vector<8x64xf32>
    %282 = arith.mulf %266, %274 : vector<8x64xf32>
    %283 = arith.addf %281, %282 : vector<8x64xf32>
    %284 = math.tanh %283 : vector<8x64xf32>
    %285 = arith.mulf %280, %284 : vector<8x64xf32>
    %286 = vector.extract_strided_slice %285 {offsets = [0, 0], sizes = [8, 32], strides = [1, 1]} : vector<8x64xf32> to vector<8x32xf32>
    %287 = arith.index_cast %250 : i32 to index
    %c0_77 = arith.constant 0 : index
    %288 = vector.load %arg12[%287, %c0_77] : memref<64x32xf32, #tpu.memory_space<vmem>>, vector<8x32xf32>
    tpu.vector_store %arg12[%287, %c0_77], %286 {strides = array<i32>} : memref<64x32xf32, #tpu.memory_space<vmem>>, vector<8x32xf32>,
    %289 = vector.extract_strided_slice %285 {offsets = [0, 32], sizes = [8, 32], strides = [1, 1]} : vector<8x64xf32> to vector<8x32xf32>
    %290 = arith.index_cast %252 : i32 to index
    %c0_78 = arith.constant 0 : index
    %291 = vector.load %arg13[%290, %c0_78] : memref<64x32xf32, #tpu.memory_space<vmem>>, vector<8x32xf32>
    tpu.vector_store %arg13[%290, %c0_78], %289 {strides = array<i32>} : memref<64x32xf32, #tpu.memory_space<vmem>>, vector<8x32xf32>,
    %c6_i32 = arith.constant 6 : i32
    %c7_i32_79 = arith.constant 7 : i32
    %292 = arith.subi %c7_i32_79, %c6_i32 : i32
    %c8_i32_80 = arith.constant 8 : i32
    %293 = arith.muli %c6_i32, %c8_i32_80 : i32
    %294 = tpu.assume_multiple %293, 8 : i32
    %c8_i32_81 = arith.constant 8 : i32
    %295 = arith.muli %292, %c8_i32_81 : i32
    %296 = tpu.assume_multiple %295, 8 : i32
    %297 = arith.index_cast %294 : i32 to index
    %c0_82 = arith.constant 0 : index
    %298 = vector.load %arg11[%297, %c0_82] : memref<64x256xf32, #tpu.memory_space<vmem>>, vector<8x256xf32>
    %299 = arith.index_cast %296 : i32 to index
    %c0_83 = arith.constant 0 : index
    %300 = vector.load %arg11[%299, %c0_83] : memref<64x256xf32, #tpu.memory_space<vmem>>, vector<8x256xf32>
    %301 = arith.select %18, %298, %300 : vector<8x256xi1>, vector<8x256xf32>
    %302 = arith.truncf %285 : vector<8x64xf32> to vector<8x64xbf16>
    %cst_84 = arith.constant dense<0.000000e+00> : vector<8x256xf32>
    %303 = tpu.matmul %302, %27, %cst_84 {dimension_numbers = #tpu.dot_dimension_numbers<[1], [0], [0], [1], [0, 0, 1, 1], [], []>} : vector<8x64xbf16>, vector<64x256xbf16>, vector<8x256xf32> -> vector<8x256xf32>
    %304 = arith.addf %301, %303 : vector<8x256xf32>
    %305 = vector.extract_strided_slice %304 {offsets = [0, 0], sizes = [8, 64], strides = [1, 1]} : vector<8x256xf32> to vector<8x64xf32>
    %306 = arith.negf %305 : vector<8x64xf32>
    %307 = math.exp %306 : vector<8x64xf32>
    %cst_85 = arith.constant 1.000000e+00 : f32
    %308 = vector.broadcast %cst_85 : f32 to vector<8x64xf32>
    %309 = arith.addf %308, %307 : vector<8x64xf32>
    %310 = arith.divf %308, %309 : vector<8x64xf32>
    %311 = vector.extract_strided_slice %304 {offsets = [0, 64], sizes = [8, 64], strides = [1, 1]} : vector<8x256xf32> to vector<8x64xf32>
    %312 = arith.negf %311 : vector<8x64xf32>
    %313 = math.exp %312 : vector<8x64xf32>
    %cst_86 = arith.constant 1.000000e+00 : f32
    %314 = vector.broadcast %cst_86 : f32 to vector<8x64xf32>
    %315 = arith.addf %314, %313 : vector<8x64xf32>
    %316 = arith.divf %314, %315 : vector<8x64xf32>
    %317 = vector.extract_strided_slice %304 {offsets = [0, 128], sizes = [8, 64], strides = [1, 1]} : vector<8x256xf32> to vector<8x64xf32>
    %318 = math.tanh %317 : vector<8x64xf32>
    %319 = vector.extract_strided_slice %304 {offsets = [0, 192], sizes = [8, 64], strides = [1, 1]} : vector<8x256xf32> to vector<8x64xf32>
    %320 = arith.negf %319 : vector<8x64xf32>
    %321 = math.exp %320 : vector<8x64xf32>
    %cst_87 = arith.constant 1.000000e+00 : f32
    %322 = vector.broadcast %cst_87 : f32 to vector<8x64xf32>
    %323 = arith.addf %322, %321 : vector<8x64xf32>
    %324 = arith.divf %322, %323 : vector<8x64xf32>
    %325 = arith.mulf %316, %283 : vector<8x64xf32>
    %326 = arith.mulf %310, %318 : vector<8x64xf32>
    %327 = arith.addf %325, %326 : vector<8x64xf32>
    %328 = math.tanh %327 : vector<8x64xf32>
    %329 = arith.mulf %324, %328 : vector<8x64xf32>
    %330 = vector.extract_strided_slice %329 {offsets = [0, 0], sizes = [8, 32], strides = [1, 1]} : vector<8x64xf32> to vector<8x32xf32>
    %331 = arith.index_cast %294 : i32 to index
    %c0_88 = arith.constant 0 : index
    %332 = vector.load %arg12[%331, %c0_88] : memref<64x32xf32, #tpu.memory_space<vmem>>, vector<8x32xf32>
    tpu.vector_store %arg12[%331, %c0_88], %330 {strides = array<i32>} : memref<64x32xf32, #tpu.memory_space<vmem>>, vector<8x32xf32>,
    %333 = vector.extract_strided_slice %329 {offsets = [0, 32], sizes = [8, 32], strides = [1, 1]} : vector<8x64xf32> to vector<8x32xf32>
    %334 = arith.index_cast %296 : i32 to index
    %c0_89 = arith.constant 0 : index
    %335 = vector.load %arg13[%334, %c0_89] : memref<64x32xf32, #tpu.memory_space<vmem>>, vector<8x32xf32>
    tpu.vector_store %arg13[%334, %c0_89], %333 {strides = array<i32>} : memref<64x32xf32, #tpu.memory_space<vmem>>, vector<8x32xf32>,
    %c7_i32_90 = arith.constant 7 : i32
    %c7_i32_91 = arith.constant 7 : i32
    %336 = arith.subi %c7_i32_91, %c7_i32_90 : i32
    %c8_i32_92 = arith.constant 8 : i32
    %337 = arith.muli %c7_i32_90, %c8_i32_92 : i32
    %338 = tpu.assume_multiple %337, 8 : i32
    %c8_i32_93 = arith.constant 8 : i32
    %339 = arith.muli %336, %c8_i32_93 : i32
    %340 = tpu.assume_multiple %339, 8 : i32
    %341 = arith.index_cast %338 : i32 to index
    %c0_94 = arith.constant 0 : index
    %342 = vector.load %arg11[%341, %c0_94] : memref<64x256xf32, #tpu.memory_space<vmem>>, vector<8x256xf32>
    %343 = arith.index_cast %340 : i32 to index
    %c0_95 = arith.constant 0 : index
    %344 = vector.load %arg11[%343, %c0_95] : memref<64x256xf32, #tpu.memory_space<vmem>>, vector<8x256xf32>
    %345 = arith.select %18, %342, %344 : vector<8x256xi1>, vector<8x256xf32>
    %346 = arith.truncf %329 : vector<8x64xf32> to vector<8x64xbf16>
    %cst_96 = arith.constant dense<0.000000e+00> : vector<8x256xf32>
    %347 = tpu.matmul %346, %27, %cst_96 {dimension_numbers = #tpu.dot_dimension_numbers<[1], [0], [0], [1], [0, 0, 1, 1], [], []>} : vector<8x64xbf16>, vector<64x256xbf16>, vector<8x256xf32> -> vector<8x256xf32>
    %348 = arith.addf %345, %347 : vector<8x256xf32>
    %349 = vector.extract_strided_slice %348 {offsets = [0, 0], sizes = [8, 64], strides = [1, 1]} : vector<8x256xf32> to vector<8x64xf32>
    %350 = arith.negf %349 : vector<8x64xf32>
    %351 = math.exp %350 : vector<8x64xf32>
    %cst_97 = arith.constant 1.000000e+00 : f32
    %352 = vector.broadcast %cst_97 : f32 to vector<8x64xf32>
    %353 = arith.addf %352, %351 : vector<8x64xf32>
    %354 = arith.divf %352, %353 : vector<8x64xf32>
    %355 = vector.extract_strided_slice %348 {offsets = [0, 64], sizes = [8, 64], strides = [1, 1]} : vector<8x256xf32> to vector<8x64xf32>
    %356 = arith.negf %355 : vector<8x64xf32>
    %357 = math.exp %356 : vector<8x64xf32>
    %cst_98 = arith.constant 1.000000e+00 : f32
    %358 = vector.broadcast %cst_98 : f32 to vector<8x64xf32>
    %359 = arith.addf %358, %357 : vector<8x64xf32>
    %360 = arith.divf %358, %359 : vector<8x64xf32>
    %361 = vector.extract_strided_slice %348 {offsets = [0, 128], sizes = [8, 64], strides = [1, 1]} : vector<8x256xf32> to vector<8x64xf32>
    %362 = math.tanh %361 : vector<8x64xf32>
    %363 = vector.extract_strided_slice %348 {offsets = [0, 192], sizes = [8, 64], strides = [1, 1]} : vector<8x256xf32> to vector<8x64xf32>
    %364 = arith.negf %363 : vector<8x64xf32>
    %365 = math.exp %364 : vector<8x64xf32>
    %cst_99 = arith.constant 1.000000e+00 : f32
    %366 = vector.broadcast %cst_99 : f32 to vector<8x64xf32>
    %367 = arith.addf %366, %365 : vector<8x64xf32>
    %368 = arith.divf %366, %367 : vector<8x64xf32>
    %369 = arith.mulf %360, %327 : vector<8x64xf32>
    %370 = arith.mulf %354, %362 : vector<8x64xf32>
    %371 = arith.addf %369, %370 : vector<8x64xf32>
    %372 = math.tanh %371 : vector<8x64xf32>
    %373 = arith.mulf %368, %372 : vector<8x64xf32>
    %374 = vector.extract_strided_slice %373 {offsets = [0, 0], sizes = [8, 32], strides = [1, 1]} : vector<8x64xf32> to vector<8x32xf32>
    %375 = arith.index_cast %338 : i32 to index
    %c0_100 = arith.constant 0 : index
    %376 = vector.load %arg12[%375, %c0_100] : memref<64x32xf32, #tpu.memory_space<vmem>>, vector<8x32xf32>
    tpu.vector_store %arg12[%375, %c0_100], %374 {strides = array<i32>} : memref<64x32xf32, #tpu.memory_space<vmem>>, vector<8x32xf32>,
    %377 = vector.extract_strided_slice %373 {offsets = [0, 32], sizes = [8, 32], strides = [1, 1]} : vector<8x64xf32> to vector<8x32xf32>
    %378 = arith.index_cast %340 : i32 to index
    %c0_101 = arith.constant 0 : index
    %379 = vector.load %arg13[%378, %c0_101] : memref<64x32xf32, #tpu.memory_space<vmem>>, vector<8x32xf32>
    tpu.vector_store %arg13[%378, %c0_101], %377 {strides = array<i32>} : memref<64x32xf32, #tpu.memory_space<vmem>>, vector<8x32xf32>,
    %c8_i32_102 = arith.constant 8 : i32
    %c0_103 = arith.constant 0 : index
    %c0_104 = arith.constant 0 : index
    %380 = vector.load %arg12[%c0_103, %c0_104] : memref<64x32xf32, #tpu.memory_space<vmem>>, vector<64x32xf32>
    %381 = arith.truncf %380 : vector<64x32xf32> to vector<64x32xbf16>
    %c0_105 = arith.constant 0 : index
    %c0_106 = arith.constant 0 : index
    %382 = vector.load %arg4[%c0_105, %c0_106] : memref<32x256xbf16, #tpu.memory_space<vmem>>, vector<32x256xbf16>
    %cst_107 = arith.constant dense<0.000000e+00> : vector<64x256xf32>
    %383 = tpu.matmul %381, %382, %cst_107 {dimension_numbers = #tpu.dot_dimension_numbers<[1], [0], [0], [1], [0, 0, 1, 1], [], []>} : vector<64x32xbf16>, vector<32x256xbf16>, vector<64x256xf32> -> vector<64x256xf32>
    %c0_108 = arith.constant 0 : index
    %c0_109 = arith.constant 0 : index
    %384 = vector.load %arg13[%c0_108, %c0_109] : memref<64x32xf32, #tpu.memory_space<vmem>>, vector<64x32xf32>
    %385 = arith.truncf %384 : vector<64x32xf32> to vector<64x32xbf16>
    %c0_110 = arith.constant 0 : index
    %c0_111 = arith.constant 0 : index
    %386 = vector.load %arg5[%c0_110, %c0_111] : memref<32x256xbf16, #tpu.memory_space<vmem>>, vector<32x256xbf16>
    %cst_112 = arith.constant dense<0.000000e+00> : vector<64x256xf32>
    %387 = tpu.matmul %385, %386, %cst_112 {dimension_numbers = #tpu.dot_dimension_numbers<[1], [0], [0], [1], [0, 0, 1, 1], [], []>} : vector<64x32xbf16>, vector<32x256xbf16>, vector<64x256xf32> -> vector<64x256xf32>
    %388 = arith.addf %383, %387 : vector<64x256xf32>
    %c0_113 = arith.constant 0 : index
    %c0_114 = arith.constant 0 : index
    %389 = vector.load %arg7[%c0_113, %c0_114] : memref<1x256xf32, #tpu.memory_space<vmem>>, vector<1x256xf32>
    %390 = vector.broadcast %389 : vector<1x256xf32> to vector<64x256xf32>
    %391 = arith.addf %388, %390 : vector<64x256xf32>
    %c0_115 = arith.constant 0 : index
    %c0_116 = arith.constant 0 : index
    %392 = vector.load %arg11[%c0_115, %c0_116] : memref<64x256xf32, #tpu.memory_space<vmem>>, vector<64x256xf32>
    tpu.vector_store %arg11[%c0_115, %c0_116], %391 {strides = array<i32>} : memref<64x256xf32, #tpu.memory_space<vmem>>, vector<64x256xf32>,
    %c0_117 = arith.constant 0 : index
    %c0_118 = arith.constant 0 : index
    %393 = vector.load %arg6[%c0_117, %c0_118] : memref<64x256xbf16, #tpu.memory_space<vmem>>, vector<64x256xbf16>
    %c0_i32_119 = arith.constant 0 : i32
    %c7_i32_120 = arith.constant 7 : i32
    %394 = arith.subi %c7_i32_120, %c0_i32_119 : i32
    %c8_i32_121 = arith.constant 8 : i32
    %395 = arith.muli %c0_i32_119, %c8_i32_121 : i32
    %396 = tpu.assume_multiple %395, 8 : i32
    %c8_i32_122 = arith.constant 8 : i32
    %397 = arith.muli %394, %c8_i32_122 : i32
    %398 = tpu.assume_multiple %397, 8 : i32
    %399 = arith.index_cast %396 : i32 to index
    %c0_123 = arith.constant 0 : index
    %400 = vector.load %arg11[%399, %c0_123] : memref<64x256xf32, #tpu.memory_space<vmem>>, vector<8x256xf32>
    %401 = arith.index_cast %398 : i32 to index
    %c0_124 = arith.constant 0 : index
    %402 = vector.load %arg11[%401, %c0_124] : memref<64x256xf32, #tpu.memory_space<vmem>>, vector<8x256xf32>
    %403 = arith.select %18, %400, %402 : vector<8x256xi1>, vector<8x256xf32>
    %404 = arith.truncf %19 : vector<8x64xf32> to vector<8x64xbf16>
    %cst_125 = arith.constant dense<0.000000e+00> : vector<8x256xf32>
    %405 = tpu.matmul %404, %393, %cst_125 {dimension_numbers = #tpu.dot_dimension_numbers<[1], [0], [0], [1], [0, 0, 1, 1], [], []>} : vector<8x64xbf16>, vector<64x256xbf16>, vector<8x256xf32> -> vector<8x256xf32>
    %406 = arith.addf %403, %405 : vector<8x256xf32>
    %407 = vector.extract_strided_slice %406 {offsets = [0, 0], sizes = [8, 64], strides = [1, 1]} : vector<8x256xf32> to vector<8x64xf32>
    %408 = arith.negf %407 : vector<8x64xf32>
    %409 = math.exp %408 : vector<8x64xf32>
    %cst_126 = arith.constant 1.000000e+00 : f32
    %410 = vector.broadcast %cst_126 : f32 to vector<8x64xf32>
    %411 = arith.addf %410, %409 : vector<8x64xf32>
    %412 = arith.divf %410, %411 : vector<8x64xf32>
    %413 = vector.extract_strided_slice %406 {offsets = [0, 64], sizes = [8, 64], strides = [1, 1]} : vector<8x256xf32> to vector<8x64xf32>
    %414 = arith.negf %413 : vector<8x64xf32>
    %415 = math.exp %414 : vector<8x64xf32>
    %cst_127 = arith.constant 1.000000e+00 : f32
    %416 = vector.broadcast %cst_127 : f32 to vector<8x64xf32>
    %417 = arith.addf %416, %415 : vector<8x64xf32>
    %418 = arith.divf %416, %417 : vector<8x64xf32>
    %419 = vector.extract_strided_slice %406 {offsets = [0, 128], sizes = [8, 64], strides = [1, 1]} : vector<8x256xf32> to vector<8x64xf32>
    %420 = math.tanh %419 : vector<8x64xf32>
    %421 = vector.extract_strided_slice %406 {offsets = [0, 192], sizes = [8, 64], strides = [1, 1]} : vector<8x256xf32> to vector<8x64xf32>
    %422 = arith.negf %421 : vector<8x64xf32>
    %423 = math.exp %422 : vector<8x64xf32>
    %cst_128 = arith.constant 1.000000e+00 : f32
    %424 = vector.broadcast %cst_128 : f32 to vector<8x64xf32>
    %425 = arith.addf %424, %423 : vector<8x64xf32>
    %426 = arith.divf %424, %425 : vector<8x64xf32>
    %427 = arith.mulf %418, %19 : vector<8x64xf32>
    %428 = arith.mulf %412, %420 : vector<8x64xf32>
    %429 = arith.addf %427, %428 : vector<8x64xf32>
    %430 = math.tanh %429 : vector<8x64xf32>
    %431 = arith.mulf %426, %430 : vector<8x64xf32>
    %c1_i32_129 = arith.constant 1 : i32
    %c7_i32_130 = arith.constant 7 : i32
    %432 = arith.subi %c7_i32_130, %c1_i32_129 : i32
    %c8_i32_131 = arith.constant 8 : i32
    %433 = arith.muli %c1_i32_129, %c8_i32_131 : i32
    %434 = tpu.assume_multiple %433, 8 : i32
    %c8_i32_132 = arith.constant 8 : i32
    %435 = arith.muli %432, %c8_i32_132 : i32
    %436 = tpu.assume_multiple %435, 8 : i32
    %437 = arith.index_cast %434 : i32 to index
    %c0_133 = arith.constant 0 : index
    %438 = vector.load %arg11[%437, %c0_133] : memref<64x256xf32, #tpu.memory_space<vmem>>, vector<8x256xf32>
    %439 = arith.index_cast %436 : i32 to index
    %c0_134 = arith.constant 0 : index
    %440 = vector.load %arg11[%439, %c0_134] : memref<64x256xf32, #tpu.memory_space<vmem>>, vector<8x256xf32>
    %441 = arith.select %18, %438, %440 : vector<8x256xi1>, vector<8x256xf32>
    %442 = arith.truncf %431 : vector<8x64xf32> to vector<8x64xbf16>
    %cst_135 = arith.constant dense<0.000000e+00> : vector<8x256xf32>
    %443 = tpu.matmul %442, %393, %cst_135 {dimension_numbers = #tpu.dot_dimension_numbers<[1], [0], [0], [1], [0, 0, 1, 1], [], []>} : vector<8x64xbf16>, vector<64x256xbf16>, vector<8x256xf32> -> vector<8x256xf32>
    %444 = arith.addf %441, %443 : vector<8x256xf32>
    %445 = vector.extract_strided_slice %444 {offsets = [0, 0], sizes = [8, 64], strides = [1, 1]} : vector<8x256xf32> to vector<8x64xf32>
    %446 = arith.negf %445 : vector<8x64xf32>
    %447 = math.exp %446 : vector<8x64xf32>
    %cst_136 = arith.constant 1.000000e+00 : f32
    %448 = vector.broadcast %cst_136 : f32 to vector<8x64xf32>
    %449 = arith.addf %448, %447 : vector<8x64xf32>
    %450 = arith.divf %448, %449 : vector<8x64xf32>
    %451 = vector.extract_strided_slice %444 {offsets = [0, 64], sizes = [8, 64], strides = [1, 1]} : vector<8x256xf32> to vector<8x64xf32>
    %452 = arith.negf %451 : vector<8x64xf32>
    %453 = math.exp %452 : vector<8x64xf32>
    %cst_137 = arith.constant 1.000000e+00 : f32
    %454 = vector.broadcast %cst_137 : f32 to vector<8x64xf32>
    %455 = arith.addf %454, %453 : vector<8x64xf32>
    %456 = arith.divf %454, %455 : vector<8x64xf32>
    %457 = vector.extract_strided_slice %444 {offsets = [0, 128], sizes = [8, 64], strides = [1, 1]} : vector<8x256xf32> to vector<8x64xf32>
    %458 = math.tanh %457 : vector<8x64xf32>
    %459 = vector.extract_strided_slice %444 {offsets = [0, 192], sizes = [8, 64], strides = [1, 1]} : vector<8x256xf32> to vector<8x64xf32>
    %460 = arith.negf %459 : vector<8x64xf32>
    %461 = math.exp %460 : vector<8x64xf32>
    %cst_138 = arith.constant 1.000000e+00 : f32
    %462 = vector.broadcast %cst_138 : f32 to vector<8x64xf32>
    %463 = arith.addf %462, %461 : vector<8x64xf32>
    %464 = arith.divf %462, %463 : vector<8x64xf32>
    %465 = arith.mulf %456, %429 : vector<8x64xf32>
    %466 = arith.mulf %450, %458 : vector<8x64xf32>
    %467 = arith.addf %465, %466 : vector<8x64xf32>
    %468 = math.tanh %467 : vector<8x64xf32>
    %469 = arith.mulf %464, %468 : vector<8x64xf32>
    %c2_i32_139 = arith.constant 2 : i32
    %c7_i32_140 = arith.constant 7 : i32
    %470 = arith.subi %c7_i32_140, %c2_i32_139 : i32
    %c8_i32_141 = arith.constant 8 : i32
    %471 = arith.muli %c2_i32_139, %c8_i32_141 : i32
    %472 = tpu.assume_multiple %471, 8 : i32
    %c8_i32_142 = arith.constant 8 : i32
    %473 = arith.muli %470, %c8_i32_142 : i32
    %474 = tpu.assume_multiple %473, 8 : i32
    %475 = arith.index_cast %472 : i32 to index
    %c0_143 = arith.constant 0 : index
    %476 = vector.load %arg11[%475, %c0_143] : memref<64x256xf32, #tpu.memory_space<vmem>>, vector<8x256xf32>
    %477 = arith.index_cast %474 : i32 to index
    %c0_144 = arith.constant 0 : index
    %478 = vector.load %arg11[%477, %c0_144] : memref<64x256xf32, #tpu.memory_space<vmem>>, vector<8x256xf32>
    %479 = arith.select %18, %476, %478 : vector<8x256xi1>, vector<8x256xf32>
    %480 = arith.truncf %469 : vector<8x64xf32> to vector<8x64xbf16>
    %cst_145 = arith.constant dense<0.000000e+00> : vector<8x256xf32>
    %481 = tpu.matmul %480, %393, %cst_145 {dimension_numbers = #tpu.dot_dimension_numbers<[1], [0], [0], [1], [0, 0, 1, 1], [], []>} : vector<8x64xbf16>, vector<64x256xbf16>, vector<8x256xf32> -> vector<8x256xf32>
    %482 = arith.addf %479, %481 : vector<8x256xf32>
    %483 = vector.extract_strided_slice %482 {offsets = [0, 0], sizes = [8, 64], strides = [1, 1]} : vector<8x256xf32> to vector<8x64xf32>
    %484 = arith.negf %483 : vector<8x64xf32>
    %485 = math.exp %484 : vector<8x64xf32>
    %cst_146 = arith.constant 1.000000e+00 : f32
    %486 = vector.broadcast %cst_146 : f32 to vector<8x64xf32>
    %487 = arith.addf %486, %485 : vector<8x64xf32>
    %488 = arith.divf %486, %487 : vector<8x64xf32>
    %489 = vector.extract_strided_slice %482 {offsets = [0, 64], sizes = [8, 64], strides = [1, 1]} : vector<8x256xf32> to vector<8x64xf32>
    %490 = arith.negf %489 : vector<8x64xf32>
    %491 = math.exp %490 : vector<8x64xf32>
    %cst_147 = arith.constant 1.000000e+00 : f32
    %492 = vector.broadcast %cst_147 : f32 to vector<8x64xf32>
    %493 = arith.addf %492, %491 : vector<8x64xf32>
    %494 = arith.divf %492, %493 : vector<8x64xf32>
    %495 = vector.extract_strided_slice %482 {offsets = [0, 128], sizes = [8, 64], strides = [1, 1]} : vector<8x256xf32> to vector<8x64xf32>
    %496 = math.tanh %495 : vector<8x64xf32>
    %497 = vector.extract_strided_slice %482 {offsets = [0, 192], sizes = [8, 64], strides = [1, 1]} : vector<8x256xf32> to vector<8x64xf32>
    %498 = arith.negf %497 : vector<8x64xf32>
    %499 = math.exp %498 : vector<8x64xf32>
    %cst_148 = arith.constant 1.000000e+00 : f32
    %500 = vector.broadcast %cst_148 : f32 to vector<8x64xf32>
    %501 = arith.addf %500, %499 : vector<8x64xf32>
    %502 = arith.divf %500, %501 : vector<8x64xf32>
    %503 = arith.mulf %494, %467 : vector<8x64xf32>
    %504 = arith.mulf %488, %496 : vector<8x64xf32>
    %505 = arith.addf %503, %504 : vector<8x64xf32>
    %506 = math.tanh %505 : vector<8x64xf32>
    %507 = arith.mulf %502, %506 : vector<8x64xf32>
    %c3_i32_149 = arith.constant 3 : i32
    %c7_i32_150 = arith.constant 7 : i32
    %508 = arith.subi %c7_i32_150, %c3_i32_149 : i32
    %c8_i32_151 = arith.constant 8 : i32
    %509 = arith.muli %c3_i32_149, %c8_i32_151 : i32
    %510 = tpu.assume_multiple %509, 8 : i32
    %c8_i32_152 = arith.constant 8 : i32
    %511 = arith.muli %508, %c8_i32_152 : i32
    %512 = tpu.assume_multiple %511, 8 : i32
    %513 = arith.index_cast %510 : i32 to index
    %c0_153 = arith.constant 0 : index
    %514 = vector.load %arg11[%513, %c0_153] : memref<64x256xf32, #tpu.memory_space<vmem>>, vector<8x256xf32>
    %515 = arith.index_cast %512 : i32 to index
    %c0_154 = arith.constant 0 : index
    %516 = vector.load %arg11[%515, %c0_154] : memref<64x256xf32, #tpu.memory_space<vmem>>, vector<8x256xf32>
    %517 = arith.select %18, %514, %516 : vector<8x256xi1>, vector<8x256xf32>
    %518 = arith.truncf %507 : vector<8x64xf32> to vector<8x64xbf16>
    %cst_155 = arith.constant dense<0.000000e+00> : vector<8x256xf32>
    %519 = tpu.matmul %518, %393, %cst_155 {dimension_numbers = #tpu.dot_dimension_numbers<[1], [0], [0], [1], [0, 0, 1, 1], [], []>} : vector<8x64xbf16>, vector<64x256xbf16>, vector<8x256xf32> -> vector<8x256xf32>
    %520 = arith.addf %517, %519 : vector<8x256xf32>
    %521 = vector.extract_strided_slice %520 {offsets = [0, 0], sizes = [8, 64], strides = [1, 1]} : vector<8x256xf32> to vector<8x64xf32>
    %522 = arith.negf %521 : vector<8x64xf32>
    %523 = math.exp %522 : vector<8x64xf32>
    %cst_156 = arith.constant 1.000000e+00 : f32
    %524 = vector.broadcast %cst_156 : f32 to vector<8x64xf32>
    %525 = arith.addf %524, %523 : vector<8x64xf32>
    %526 = arith.divf %524, %525 : vector<8x64xf32>
    %527 = vector.extract_strided_slice %520 {offsets = [0, 64], sizes = [8, 64], strides = [1, 1]} : vector<8x256xf32> to vector<8x64xf32>
    %528 = arith.negf %527 : vector<8x64xf32>
    %529 = math.exp %528 : vector<8x64xf32>
    %cst_157 = arith.constant 1.000000e+00 : f32
    %530 = vector.broadcast %cst_157 : f32 to vector<8x64xf32>
    %531 = arith.addf %530, %529 : vector<8x64xf32>
    %532 = arith.divf %530, %531 : vector<8x64xf32>
    %533 = vector.extract_strided_slice %520 {offsets = [0, 128], sizes = [8, 64], strides = [1, 1]} : vector<8x256xf32> to vector<8x64xf32>
    %534 = math.tanh %533 : vector<8x64xf32>
    %535 = vector.extract_strided_slice %520 {offsets = [0, 192], sizes = [8, 64], strides = [1, 1]} : vector<8x256xf32> to vector<8x64xf32>
    %536 = arith.negf %535 : vector<8x64xf32>
    %537 = math.exp %536 : vector<8x64xf32>
    %cst_158 = arith.constant 1.000000e+00 : f32
    %538 = vector.broadcast %cst_158 : f32 to vector<8x64xf32>
    %539 = arith.addf %538, %537 : vector<8x64xf32>
    %540 = arith.divf %538, %539 : vector<8x64xf32>
    %541 = arith.mulf %532, %505 : vector<8x64xf32>
    %542 = arith.mulf %526, %534 : vector<8x64xf32>
    %543 = arith.addf %541, %542 : vector<8x64xf32>
    %544 = math.tanh %543 : vector<8x64xf32>
    %545 = arith.mulf %540, %544 : vector<8x64xf32>
    %c4_i32_159 = arith.constant 4 : i32
    %c7_i32_160 = arith.constant 7 : i32
    %546 = arith.subi %c7_i32_160, %c4_i32_159 : i32
    %c8_i32_161 = arith.constant 8 : i32
    %547 = arith.muli %c4_i32_159, %c8_i32_161 : i32
    %548 = tpu.assume_multiple %547, 8 : i32
    %c8_i32_162 = arith.constant 8 : i32
    %549 = arith.muli %546, %c8_i32_162 : i32
    %550 = tpu.assume_multiple %549, 8 : i32
    %551 = arith.index_cast %548 : i32 to index
    %c0_163 = arith.constant 0 : index
    %552 = vector.load %arg11[%551, %c0_163] : memref<64x256xf32, #tpu.memory_space<vmem>>, vector<8x256xf32>
    %553 = arith.index_cast %550 : i32 to index
    %c0_164 = arith.constant 0 : index
    %554 = vector.load %arg11[%553, %c0_164] : memref<64x256xf32, #tpu.memory_space<vmem>>, vector<8x256xf32>
    %555 = arith.select %18, %552, %554 : vector<8x256xi1>, vector<8x256xf32>
    %556 = arith.truncf %545 : vector<8x64xf32> to vector<8x64xbf16>
    %cst_165 = arith.constant dense<0.000000e+00> : vector<8x256xf32>
    %557 = tpu.matmul %556, %393, %cst_165 {dimension_numbers = #tpu.dot_dimension_numbers<[1], [0], [0], [1], [0, 0, 1, 1], [], []>} : vector<8x64xbf16>, vector<64x256xbf16>, vector<8x256xf32> -> vector<8x256xf32>
    %558 = arith.addf %555, %557 : vector<8x256xf32>
    %559 = vector.extract_strided_slice %558 {offsets = [0, 0], sizes = [8, 64], strides = [1, 1]} : vector<8x256xf32> to vector<8x64xf32>
    %560 = arith.negf %559 : vector<8x64xf32>
    %561 = math.exp %560 : vector<8x64xf32>
    %cst_166 = arith.constant 1.000000e+00 : f32
    %562 = vector.broadcast %cst_166 : f32 to vector<8x64xf32>
    %563 = arith.addf %562, %561 : vector<8x64xf32>
    %564 = arith.divf %562, %563 : vector<8x64xf32>
    %565 = vector.extract_strided_slice %558 {offsets = [0, 64], sizes = [8, 64], strides = [1, 1]} : vector<8x256xf32> to vector<8x64xf32>
    %566 = arith.negf %565 : vector<8x64xf32>
    %567 = math.exp %566 : vector<8x64xf32>
    %cst_167 = arith.constant 1.000000e+00 : f32
    %568 = vector.broadcast %cst_167 : f32 to vector<8x64xf32>
    %569 = arith.addf %568, %567 : vector<8x64xf32>
    %570 = arith.divf %568, %569 : vector<8x64xf32>
    %571 = vector.extract_strided_slice %558 {offsets = [0, 128], sizes = [8, 64], strides = [1, 1]} : vector<8x256xf32> to vector<8x64xf32>
    %572 = math.tanh %571 : vector<8x64xf32>
    %573 = vector.extract_strided_slice %558 {offsets = [0, 192], sizes = [8, 64], strides = [1, 1]} : vector<8x256xf32> to vector<8x64xf32>
    %574 = arith.negf %573 : vector<8x64xf32>
    %575 = math.exp %574 : vector<8x64xf32>
    %cst_168 = arith.constant 1.000000e+00 : f32
    %576 = vector.broadcast %cst_168 : f32 to vector<8x64xf32>
    %577 = arith.addf %576, %575 : vector<8x64xf32>
    %578 = arith.divf %576, %577 : vector<8x64xf32>
    %579 = arith.mulf %570, %543 : vector<8x64xf32>
    %580 = arith.mulf %564, %572 : vector<8x64xf32>
    %581 = arith.addf %579, %580 : vector<8x64xf32>
    %582 = math.tanh %581 : vector<8x64xf32>
    %583 = arith.mulf %578, %582 : vector<8x64xf32>
    %c5_i32_169 = arith.constant 5 : i32
    %c7_i32_170 = arith.constant 7 : i32
    %584 = arith.subi %c7_i32_170, %c5_i32_169 : i32
    %c8_i32_171 = arith.constant 8 : i32
    %585 = arith.muli %c5_i32_169, %c8_i32_171 : i32
    %586 = tpu.assume_multiple %585, 8 : i32
    %c8_i32_172 = arith.constant 8 : i32
    %587 = arith.muli %584, %c8_i32_172 : i32
    %588 = tpu.assume_multiple %587, 8 : i32
    %589 = arith.index_cast %586 : i32 to index
    %c0_173 = arith.constant 0 : index
    %590 = vector.load %arg11[%589, %c0_173] : memref<64x256xf32, #tpu.memory_space<vmem>>, vector<8x256xf32>
    %591 = arith.index_cast %588 : i32 to index
    %c0_174 = arith.constant 0 : index
    %592 = vector.load %arg11[%591, %c0_174] : memref<64x256xf32, #tpu.memory_space<vmem>>, vector<8x256xf32>
    %593 = arith.select %18, %590, %592 : vector<8x256xi1>, vector<8x256xf32>
    %594 = arith.truncf %583 : vector<8x64xf32> to vector<8x64xbf16>
    %cst_175 = arith.constant dense<0.000000e+00> : vector<8x256xf32>
    %595 = tpu.matmul %594, %393, %cst_175 {dimension_numbers = #tpu.dot_dimension_numbers<[1], [0], [0], [1], [0, 0, 1, 1], [], []>} : vector<8x64xbf16>, vector<64x256xbf16>, vector<8x256xf32> -> vector<8x256xf32>
    %596 = arith.addf %593, %595 : vector<8x256xf32>
    %597 = vector.extract_strided_slice %596 {offsets = [0, 0], sizes = [8, 64], strides = [1, 1]} : vector<8x256xf32> to vector<8x64xf32>
    %598 = arith.negf %597 : vector<8x64xf32>
    %599 = math.exp %598 : vector<8x64xf32>
    %cst_176 = arith.constant 1.000000e+00 : f32
    %600 = vector.broadcast %cst_176 : f32 to vector<8x64xf32>
    %601 = arith.addf %600, %599 : vector<8x64xf32>
    %602 = arith.divf %600, %601 : vector<8x64xf32>
    %603 = vector.extract_strided_slice %596 {offsets = [0, 64], sizes = [8, 64], strides = [1, 1]} : vector<8x256xf32> to vector<8x64xf32>
    %604 = arith.negf %603 : vector<8x64xf32>
    %605 = math.exp %604 : vector<8x64xf32>
    %cst_177 = arith.constant 1.000000e+00 : f32
    %606 = vector.broadcast %cst_177 : f32 to vector<8x64xf32>
    %607 = arith.addf %606, %605 : vector<8x64xf32>
    %608 = arith.divf %606, %607 : vector<8x64xf32>
    %609 = vector.extract_strided_slice %596 {offsets = [0, 128], sizes = [8, 64], strides = [1, 1]} : vector<8x256xf32> to vector<8x64xf32>
    %610 = math.tanh %609 : vector<8x64xf32>
    %611 = vector.extract_strided_slice %596 {offsets = [0, 192], sizes = [8, 64], strides = [1, 1]} : vector<8x256xf32> to vector<8x64xf32>
    %612 = arith.negf %611 : vector<8x64xf32>
    %613 = math.exp %612 : vector<8x64xf32>
    %cst_178 = arith.constant 1.000000e+00 : f32
    %614 = vector.broadcast %cst_178 : f32 to vector<8x64xf32>
    %615 = arith.addf %614, %613 : vector<8x64xf32>
    %616 = arith.divf %614, %615 : vector<8x64xf32>
    %617 = arith.mulf %608, %581 : vector<8x64xf32>
    %618 = arith.mulf %602, %610 : vector<8x64xf32>
    %619 = arith.addf %617, %618 : vector<8x64xf32>
    %620 = math.tanh %619 : vector<8x64xf32>
    %621 = arith.mulf %616, %620 : vector<8x64xf32>
    %c6_i32_179 = arith.constant 6 : i32
    %c7_i32_180 = arith.constant 7 : i32
    %622 = arith.subi %c7_i32_180, %c6_i32_179 : i32
    %c8_i32_181 = arith.constant 8 : i32
    %623 = arith.muli %c6_i32_179, %c8_i32_181 : i32
    %624 = tpu.assume_multiple %623, 8 : i32
    %c8_i32_182 = arith.constant 8 : i32
    %625 = arith.muli %622, %c8_i32_182 : i32
    %626 = tpu.assume_multiple %625, 8 : i32
    %627 = arith.index_cast %624 : i32 to index
    %c0_183 = arith.constant 0 : index
    %628 = vector.load %arg11[%627, %c0_183] : memref<64x256xf32, #tpu.memory_space<vmem>>, vector<8x256xf32>
    %629 = arith.index_cast %626 : i32 to index
    %c0_184 = arith.constant 0 : index
    %630 = vector.load %arg11[%629, %c0_184] : memref<64x256xf32, #tpu.memory_space<vmem>>, vector<8x256xf32>
    %631 = arith.select %18, %628, %630 : vector<8x256xi1>, vector<8x256xf32>
    %632 = arith.truncf %621 : vector<8x64xf32> to vector<8x64xbf16>
    %cst_185 = arith.constant dense<0.000000e+00> : vector<8x256xf32>
    %633 = tpu.matmul %632, %393, %cst_185 {dimension_numbers = #tpu.dot_dimension_numbers<[1], [0], [0], [1], [0, 0, 1, 1], [], []>} : vector<8x64xbf16>, vector<64x256xbf16>, vector<8x256xf32> -> vector<8x256xf32>
    %634 = arith.addf %631, %633 : vector<8x256xf32>
    %635 = vector.extract_strided_slice %634 {offsets = [0, 0], sizes = [8, 64], strides = [1, 1]} : vector<8x256xf32> to vector<8x64xf32>
    %636 = arith.negf %635 : vector<8x64xf32>
    %637 = math.exp %636 : vector<8x64xf32>
    %cst_186 = arith.constant 1.000000e+00 : f32
    %638 = vector.broadcast %cst_186 : f32 to vector<8x64xf32>
    %639 = arith.addf %638, %637 : vector<8x64xf32>
    %640 = arith.divf %638, %639 : vector<8x64xf32>
    %641 = vector.extract_strided_slice %634 {offsets = [0, 64], sizes = [8, 64], strides = [1, 1]} : vector<8x256xf32> to vector<8x64xf32>
    %642 = arith.negf %641 : vector<8x64xf32>
    %643 = math.exp %642 : vector<8x64xf32>
    %cst_187 = arith.constant 1.000000e+00 : f32
    %644 = vector.broadcast %cst_187 : f32 to vector<8x64xf32>
    %645 = arith.addf %644, %643 : vector<8x64xf32>
    %646 = arith.divf %644, %645 : vector<8x64xf32>
    %647 = vector.extract_strided_slice %634 {offsets = [0, 128], sizes = [8, 64], strides = [1, 1]} : vector<8x256xf32> to vector<8x64xf32>
    %648 = math.tanh %647 : vector<8x64xf32>
    %649 = vector.extract_strided_slice %634 {offsets = [0, 192], sizes = [8, 64], strides = [1, 1]} : vector<8x256xf32> to vector<8x64xf32>
    %650 = arith.negf %649 : vector<8x64xf32>
    %651 = math.exp %650 : vector<8x64xf32>
    %cst_188 = arith.constant 1.000000e+00 : f32
    %652 = vector.broadcast %cst_188 : f32 to vector<8x64xf32>
    %653 = arith.addf %652, %651 : vector<8x64xf32>
    %654 = arith.divf %652, %653 : vector<8x64xf32>
    %655 = arith.mulf %646, %619 : vector<8x64xf32>
    %656 = arith.mulf %640, %648 : vector<8x64xf32>
    %657 = arith.addf %655, %656 : vector<8x64xf32>
    %658 = math.tanh %657 : vector<8x64xf32>
    %659 = arith.mulf %654, %658 : vector<8x64xf32>
    %c7_i32_189 = arith.constant 7 : i32
    %c7_i32_190 = arith.constant 7 : i32
    %660 = arith.subi %c7_i32_190, %c7_i32_189 : i32
    %c8_i32_191 = arith.constant 8 : i32
    %661 = arith.muli %c7_i32_189, %c8_i32_191 : i32
    %662 = tpu.assume_multiple %661, 8 : i32
    %c8_i32_192 = arith.constant 8 : i32
    %663 = arith.muli %660, %c8_i32_192 : i32
    %664 = tpu.assume_multiple %663, 8 : i32
    %665 = arith.index_cast %662 : i32 to index
    %c0_193 = arith.constant 0 : index
    %666 = vector.load %arg11[%665, %c0_193] : memref<64x256xf32, #tpu.memory_space<vmem>>, vector<8x256xf32>
    %667 = arith.index_cast %664 : i32 to index
    %c0_194 = arith.constant 0 : index
    %668 = vector.load %arg11[%667, %c0_194] : memref<64x256xf32, #tpu.memory_space<vmem>>, vector<8x256xf32>
    %669 = arith.select %18, %666, %668 : vector<8x256xi1>, vector<8x256xf32>
    %670 = arith.truncf %659 : vector<8x64xf32> to vector<8x64xbf16>
    %cst_195 = arith.constant dense<0.000000e+00> : vector<8x256xf32>
    %671 = tpu.matmul %670, %393, %cst_195 {dimension_numbers = #tpu.dot_dimension_numbers<[1], [0], [0], [1], [0, 0, 1, 1], [], []>} : vector<8x64xbf16>, vector<64x256xbf16>, vector<8x256xf32> -> vector<8x256xf32>
    %672 = arith.addf %669, %671 : vector<8x256xf32>
    %673 = vector.extract_strided_slice %672 {offsets = [0, 0], sizes = [8, 64], strides = [1, 1]} : vector<8x256xf32> to vector<8x64xf32>
    %674 = arith.negf %673 : vector<8x64xf32>
    %675 = math.exp %674 : vector<8x64xf32>
    %cst_196 = arith.constant 1.000000e+00 : f32
    %676 = vector.broadcast %cst_196 : f32 to vector<8x64xf32>
    %677 = arith.addf %676, %675 : vector<8x64xf32>
    %678 = arith.divf %676, %677 : vector<8x64xf32>
    %679 = vector.extract_strided_slice %672 {offsets = [0, 64], sizes = [8, 64], strides = [1, 1]} : vector<8x256xf32> to vector<8x64xf32>
    %680 = arith.negf %679 : vector<8x64xf32>
    %681 = math.exp %680 : vector<8x64xf32>
    %cst_197 = arith.constant 1.000000e+00 : f32
    %682 = vector.broadcast %cst_197 : f32 to vector<8x64xf32>
    %683 = arith.addf %682, %681 : vector<8x64xf32>
    %684 = arith.divf %682, %683 : vector<8x64xf32>
    %685 = vector.extract_strided_slice %672 {offsets = [0, 128], sizes = [8, 64], strides = [1, 1]} : vector<8x256xf32> to vector<8x64xf32>
    %686 = math.tanh %685 : vector<8x64xf32>
    %687 = vector.extract_strided_slice %672 {offsets = [0, 192], sizes = [8, 64], strides = [1, 1]} : vector<8x256xf32> to vector<8x64xf32>
    %688 = arith.negf %687 : vector<8x64xf32>
    %689 = math.exp %688 : vector<8x64xf32>
    %cst_198 = arith.constant 1.000000e+00 : f32
    %690 = vector.broadcast %cst_198 : f32 to vector<8x64xf32>
    %691 = arith.addf %690, %689 : vector<8x64xf32>
    %692 = arith.divf %690, %691 : vector<8x64xf32>
    %693 = arith.mulf %684, %657 : vector<8x64xf32>
    %694 = arith.mulf %678, %686 : vector<8x64xf32>
    %695 = arith.addf %693, %694 : vector<8x64xf32>
    %696 = math.tanh %695 : vector<8x64xf32>
    %697 = arith.mulf %692, %696 : vector<8x64xf32>
    %c8_i32_199 = arith.constant 8 : i32
    %c0_200 = arith.constant 0 : index
    %c0_201 = arith.constant 0 : index
    %698 = vector.load %arg8[%c0_200, %c0_201] : memref<1x64xf32, #tpu.memory_space<vmem>>, vector<1x64xf32>
    %699 = vector.broadcast %698 : vector<1x64xf32> to vector<8x64xf32>
    %700 = arith.mulf %697, %699 : vector<8x64xf32>
    %cst_202 = arith.constant dense<0.000000e+00> : vector<8xf32>
    %701 = vector.multi_reduction <add>, %700, %cst_202 [1] : vector<8x64xf32> to vector<8xf32>
    %702 = vector.shape_cast %701 : vector<8xf32> to vector<8x1xf32>
    %c0_203 = arith.constant 0 : index
    %c0_204 = arith.constant 0 : index
    %703 = vector.load %arg9[%c0_203, %c0_204] : memref<1x1xf32, #tpu.memory_space<vmem>>, vector<1x1xf32>
    %704 = vector.broadcast %703 : vector<1x1xf32> to vector<8x1xf32>
    %705 = arith.addf %702, %704 : vector<8x1xf32>
    %c0_205 = arith.constant 0 : index
    %c0_206 = arith.constant 0 : index
    %706 = vector.load %arg10[%c0_205, %c0_206] : memref<8x1xf32, #tpu.memory_space<vmem>>, vector<8x1xf32>
    tpu.vector_store %arg10[%c0_205, %c0_206], %705 {strides = array<i32>} : memref<8x1xf32, #tpu.memory_space<vmem>>, vector<8x1xf32>,
    return
  }
}

</mosaic_0001>

<bundles_post_ra>
// kernel: rnn_forward.1
= control target key start
LH: loop header
LB: loop body
LE: loop exit
PB: predicated region body
PF: predicated region fallthrough
CT: control target
= control target key end

     0   :  { %v2338_v1 = vmov 0   ;;  %vm131_vm0 = vcmask 261120   ;;  %v38_v17 = vlaneseq  ;;  %vm293_vm3 = vcmask 523264   ;;  %s2340_s24 = smov 32   ;;  %s3156_s1 = inlined_call_operand.vmem [shape: bf16[32,256], index: 1, kind: input, shape index: {}]   ;;  %s3157_s0 = inlined_call_operand.vmem [shape: bf16[64,32], index: 0, kind: input, shape index: {}]   ;;  %s3158_s2 = inlined_call_operand.vmem [shape: bf16[64,256], index: 2, kind: input, shape index: {}]   ;;  %s3159_s3 = inlined_call_operand.vmem [shape: f32[1,256], index: 3, kind: input, shape index: {}]   ;;  %s3160_s5 = inlined_call_operand.vmem [shape: bf16[32,256], index: 5, kind: input, shape index: {}]   ;;  %s3161_s4 = inlined_call_operand.vmem [shape: bf16[32,256], index: 4, kind: input, shape index: {}]   ;;  %s3162_s6 = inlined_call_operand.vmem [shape: bf16[64,256], index: 6, kind: input, shape index: {}]   ;;  %s3163_s7 = inlined_call_operand.vmem [shape: f32[1,256], index: 7, kind: input, shape index: {}]   ;;  %s3164_s8 = inlined_call_operand.vmem [shape: f32[1,64], index: 8, kind: input, shape index: {}]   ;;  %s3165_s9 = inlined_call_operand.<no memory space> [shape: f32[1,1], index: 9, kind: input, shape index: {}]   ;;  %s3166_s10 = inlined_call_operand.vmem [shape: f32[8,1], index: 10, kind: output, shape index: {}]  }
   0x1   :  { %v2100_v0 = vld [vmem:[%s3156_s1 + $0x4] ss:$8 sps:$4 sm:$0xff]   ;;  %176 = vmatprep.mubr.bf16.mxu0 %v2338_v1  ;;  %196 = vmatprep.mubr.bf16.mxu1 %v2338_v1  ;;  %v2102_v2 = vld [vmem:[%s3156_s1] ss:$8 sps:$4 sm:$0xff]   ;;  %v2103_v3 = vld [vmem:[%s3156_s1 + $0x14] ss:$8 sps:$4 sm:$0xff]  }
   0x2   :  { %144 = vmatprep.subr.bf16.mxu0 %v2100_v0  ;;  %2077 = vmatprep.subr.bf16.mxu1 %v2100_v0  ;;  %v2105_v4 = vld [vmem:[%s3156_s1 + $0x10] ss:$8 sps:$4 sm:$0xff]   ;;  %v2106_v5 = vld [vmem:[%s3157_s0] sm:$0xff]   ;;  %v2430_v9 = vld [vmem:[%s3158_s2 + $0x14] ss:$8 sps:$4 sm:$0xff]   ;;  %v2498_v18 = vshrl.u32 %v38_v17, 7 }
   0x3   :  { %145 = vmatpush1.bf16.msra.mxu0 %v2102_v2  ;;  %2079 = vmatpush1.bf16.msra.mxu1 %v2102_v2  ;;  %v2416_v6 = vld [vmem:[%s3158_s2 + $0x4] ss:$8 sps:$4 sm:$0xff]   ;;  %v2107_v7 = vld [vmem:[%s3157_s0 + $0x10] sm:$0xff]   ;;  %v2424_v8 = vld [vmem:[%s3158_s2] ss:$8 sps:$4 sm:$0xff]   ;;  %v39_v22 = vand.u32 127, %v38_v17 }
   0x4   :  { %146 = vmatprep.subr.bf16.mxu0 %v2103_v3  ;;  %2078 = vmatprep.subr.bf16.mxu1 %v2103_v3  ;;  %v2439_v10 = vld [vmem:[%s3158_s2 + $0x10] ss:$8 sps:$4 sm:$0xff]   ;;  %v2447_v11 = vld [vmem:[%s3158_s2 + $0x24] ss:$8 sps:$4 sm:$0xff]   ;;  %v2461_v14 = vld [vmem:[%s3158_s2 + $0x20] ss:$8 sps:$4 sm:$0xff]  }
   0x5   :  { %v2114_v12 = vld [vmem:[%s3157_s0 + $0x8] sm:$0xff]   ;;  %v2115_v13 = vld [vmem:[%s3157_s0 + $0x18] sm:$0xff]   ;;  %v83_v19 = vsub.s32 0, %v2498_v18  ;;  %v79_v20 = vld [vmem:[%s3159_s3] sm:$0x3]  ;;  %v87_v21 = vsub.s32 1, %v2498_v18 }
   0x6   :  { %v2467_v15 = vld [vmem:[%s3158_s2 + $0x34] ss:$8 sps:$4 sm:$0xff]   ;;  %v2476_v16 = vld [vmem:[%s3158_s2 + $0x30] ss:$8 sps:$4 sm:$0xff]   ;;  %v40_v27 = vadd.s32 128, %v39_v22  ;;  %v45_v38 = vand.u32 63, %v39_v22 }
   0x7   :  { %147 = vmatpush1.bf16.msra.mxu0 %v2105_v4  ;;  %2080 = vmatpush1.bf16.msra.mxu1 %v2105_v4  ;;  %v84_v23 = vrot.slane %v79_v20, %v83_v19  ;;  %v88_v24 = vrot.slane %v79_v20, %v87_v21  ;;  %s2339_s3 = smov 64   ;;  %vm1972_vm4 = vcmask 7168  }
   0x8   :  { %297 = vmatprep.subr.bf16.mxu1 %v2416_v6  ;;  %486 = vmatprep.subr.bf16.mxu0 %v2416_v6  ;;  %v52_v41 = vand.u32 63, %v40_v27  ;;  %vm2521_vm1 = vcmp.lt.s32.totalorder %v45_v38, 32 }
   0xa   :  { %1993 = vmatmul.mubr.msk.bf16.vlgmr.msra.gmra.mrb[0].mxu0 %vm131_vm0, %v2106_v5  ;;  %1995 = vmatmul.mubr.msk.bf16.vlgmr.msra.gmra.mrb[0].mxu1 %vm131_vm0, %v2107_v7  ;;  %vm2525_vm2 = vcmp.lt.s32.totalorder %v52_v41, 32 }
   0xb   :  { %298 = vmatpush1.bf16.msra.mxu1 %v2424_v8  ;;  %186 = vmatprep.mubr.bf16.mxu0 %v2338_v1 }
   0xc   :  { %299 = vmatprep.subr.bf16.mxu1 %v2430_v9  ;;  %206 = vmatprep.mubr.bf16.mxu1 %v2338_v1 }
   0xd   :  { %487 = vmatpush1.bf16.msra.mxu0 %v2424_v8 }
   0xe   :  { %488 = vmatprep.subr.bf16.mxu0 %v2430_v9 }
   0xf   :  { %300 = vmatpush1.bf16.msra.mxu1 %v2439_v10 }
  0x10   :  { %301 = vmatprep.subr.bf16.mxu1 %v2447_v11 }
  0x11   :  { %489 = vmatpush1.bf16.msra.mxu0 %v2439_v10 }
  0x12   :  { %1994 = vmatmul.mubr.msk.bf16.gmra.mrb[4].mxu0 %vm131_vm0, %v2114_v12  ;;  %1996 = vmatmul.mubr.msk.bf16.gmra.mrb[4].mxu1 %vm131_vm0, %v2115_v13 }
  0x13   :  { %302 = vmatpush1.bf16.msra.mxu1 %v2461_v14  ;;  %329 = vmatprep.mubr.bf16.mxu1 %v2338_v1 }
  0x14   :  { %303 = vmatprep.subr.bf16.mxu1 %v2467_v15  ;;  %490 = vmatprep.subr.bf16.mxu0 %v2447_v11 }
  0x15   :  { %491 = vmatpush1.bf16.msra.mxu0 %v2461_v14  ;;  %518 = vmatprep.mubr.bf16.mxu0 %v2338_v1 }
  0x16   :  { %492 = vmatprep.subr.bf16.mxu0 %v2467_v15 }
  0x17   :  { %304 = vmatpush1.bf16.msra.mxu1 %v2476_v16 }
  0x18   :  { %391 = vmatprep.subr.bf16.mxu1 %v2416_v6 }
  0x19   :  { %493 = vmatpush1.bf16.msra.mxu0 %v2476_v16 }
  0x1a   :  { %330 = vmatmul.mubr.bf16.vlgmr.msra.gmra.mrb[8].mxu1 %v2338_v1  ;;  %670 = vmatprep.subr.bf16.mxu0 %v2416_v6 }
  0x1b   :  { %392 = vmatpush1.bf16.msra.mxu1 %v2424_v8  ;;  %423 = vmatprep.mubr.bf16.mxu1 %v2338_v1 }
  0x1c   :  { %393 = vmatprep.subr.bf16.mxu1 %v2430_v9 }
  0x1f   :  { %394 = vmatpush1.bf16.msra.mxu1 %v2439_v10 }
  0x20   :  { %395 = vmatprep.subr.bf16.mxu1 %v2447_v11 }
  0x23   :  { %396 = vmatpush1.bf16.msra.mxu1 %v2461_v14 }
  0x24   :  { %397 = vmatprep.subr.bf16.mxu1 %v2467_v15 }
  0x27   :  { %398 = vmatpush1.bf16.msra.mxu1 %v2476_v16 }
  0x28   :  { %581 = vmatprep.subr.bf16.mxu1 %v2416_v6 }
  0xdd   :  { %v198_v25 = vpop.f32.mrb[0].mxu1  ;;  %v178_v26 = vpop.f32.mrb[0].mxu0 }
  0xde   :  { %v2509_v28 = vadd.f32 %v198_v25, %v84_v23  ;;  %v200_v29 = vpop.f32.mrb[1].mxu1  ;;  %v180_v30 = vpop.f32.mrb[1].mxu0  ;;  %v2529_v46 = vadd.f32 %v178_v26, %v84_v23 }
  0xdf   :  { %v2511_v31 = vadd.f32 %v200_v29, %v88_v24  ;;  %v202_v32 = vpop.f32.mrb[2].mxu1  ;;  %v182_v33 = vpop.f32.mrb[2].mxu0  ;;  %v2535_v51 = vadd.f32 %v180_v30, %v88_v24 }
  0xe0   :  { %v2513_v34 = vadd.f32 %v202_v32, %v84_v23  ;;  %v204_v35 = vpop.f32.mrb[3].mxu1  ;;  %v2515_v36 = vadd.f32 %v182_v33, %v84_v23  ;;  %v184_v37 = vpop.f32.mrb[3].mxu0 }
  0xe1   :  { %v2517_v39 = vadd.f32 %v204_v35, %v88_v24  ;;  %v2519_v40 = vadd.f32 %v184_v37, %v88_v24 }
  0xe5   :  { %v188_v43 = vpop.f32.mrb[4].mxu0  ;;  %v208_v44 = vpop.f32.mrb[4].mxu1 }
  0xe6   :  { %v2531_v47 = vadd.f32 %v188_v43, %v84_v23  ;;  %v2533_v48 = vadd.f32 %v208_v44, %v84_v23  ;;  %v190_v49 = vpop.f32.mrb[5].mxu0  ;;  %v210_v50 = vpop.f32.mrb[5].mxu1 }
  0xe7   :  { %v2537_v52 = vadd.f32 %v190_v49, %v88_v24  ;;  %v2539_v53 = vadd.f32 %v210_v50, %v88_v24  ;;  %v192_v54 = vpop.f32.mrb[6].mxu0  ;;  %v212_v55 = vpop.f32.mrb[6].mxu1 }
  0xe8   :  { %v2541_v56 = vadd.f32 %v192_v54, %v84_v23  ;;  %v2543_v57 = vadd.f32 %v212_v55, %v84_v23  ;;  %v194_v58 = vpop.f32.mrb[7].mxu0  ;;  %v214_v59 = vpop.f32.mrb[7].mxu1  ;;  %v382_v60 = vsel %vm2521_vm1, %v2515_v36, %v2533_v48  ;;  %v477_v61 = vsel %vm2521_vm1, %v2531_v47, %v2513_v34 }
  0xe9   :  { %v2553_v62 = vadd.f32 %v194_v58, %v88_v24  ;;  %v2555_v63 = vadd.f32 %v214_v59, %v88_v24  ;;  %v383_v0 = vsel %vm2525_vm2, %v2519_v40, %v2539_v53  ;;  %v478_v2 = vsel %vm2525_vm2, %v2537_v52, %v2517_v39 }
  0xea   :  { %v251_v3 = vsel %vm2521_vm1, %v2529_v46, %v2543_v57  ;;  %v572_v4 = vsel %vm2521_vm1, %v2541_v56, %v2509_v28  ;;  %v661_v5 = vsel %vm2521_vm1, %v2509_v28, %v2541_v56  ;;  %v750_v7 = vsel %vm2521_vm1, %v2513_v34, %v2531_v47 }
  0xeb   :  { %v252_v12 = vsel %vm2525_vm2, %v2535_v51, %v2555_v63  ;;  %v573_v13 = vsel %vm2525_vm2, %v2553_v62, %v2511_v31  ;;  %v662_v17 = vsel %vm2525_vm2, %v2511_v31, %v2553_v62  ;;  %v751_v20 = vsel %vm2525_vm2, %v2517_v39, %v2537_v52 }
  0xec   :  { %v839_v22 = vsel %vm2521_vm1, %v2533_v48, %v2515_v36  ;;  %v840_v23 = vsel %vm2525_vm2, %v2539_v53, %v2519_v40  ;;  %v928_v24 = vsel %vm2521_vm1, %v2543_v57, %v2529_v46  ;;  %v929_v25 = vsel %vm2525_vm2, %v2555_v63, %v2535_v51 }
  0xed   :  { %v331_v26 = vpop.f32.mrb[8].mxu1 }
  0xee   :  { %v338_v27 = vadd.f32 %v331_v26, %v251_v3  ;;  %v333_v29 = vpop.f32.mrb[9].mxu1 }
  0xef   :  { %v339_v30 = vadd.f32 %v333_v29, %v252_v12  ;;  %v335_v32 = vpop.f32.mrb[10].mxu1 }
  0xf0   :  { %v2005_v33 = vmul.f32 -1.442695, %v338_v27  ;;  %v336_v35 = vpop.f32.mrb[11].mxu1 }
  0xf1   :  { %v2006_v49 = vmul.f32 -1.442695, %v339_v30 }
  0xf2   :  { %2146 = vpow2.f32 %v2005_v33 }
  0xf3   :  { %2148 = vtanh.f32 %v339_v30 }
  0xfc   :  { %v2147_v37 = vpop.eup %2146 }
  0xfd   :  { %v343_v38 = vadd.f32 1.0, %v2147_v37  ;;  %v2149_v41 = vpop.eup %2148 }
  0xff   :  { %2150 = vrcp.f32 %v343_v38 }
 0x100   :  { %2152 = vpow2.f32 %v2006_v49 }
 0x109   :  { %v2151_v43 = vpop.eup %2150 }
 0x10a   :  { %v354_v44 = vmul.f32 %v2151_v43, %v2149_v41  ;;  %v2153_v50 = vpop.eup %2152  ;;  %v353_v55 = vmul.f32 0.0, %v2151_v43 }
 0x10b   :  { %v350_v54 = vadd.f32 1.0, %v2153_v50 }
 0x10c   :  { %356 = vrot.lane.b32.xlu0 %v354_v44, %s2339_s3 }
 0x10d   :  { %2154 = vrcp.f32 %v350_v54 }
 0x117   :  { %v2155_v3 = vpop.eup %2154 }
 0x17e   :  { %v357_v58 = vpop.permute.xlu0 %356 }
 0x17f   :  { %v359_v59 = vadd.f32 %v357_v58, %v353_v55 }
 0x181   :  { %2156 = vtanh.f32 %v359_v59 }
 0x18b   :  { %v2157_v12 = vpop.eup %2156 }
 0x18c   :  { %v2614_v26 = vmul.f32 %v2157_v12, %v2155_v3 }
 0x18e   :  { %v384_v27 = vpack.c.bf16 %v2614_v26, %v2614_v26 }
 0x190   :  { %386 = vrot.lane.b32.xlu0 %v384_v27, %s2339_s3 }
 0x202   :  { %v387_v29 = vpop.permute.xlu0 %386 }
 0x203   :  { %2007 = vmatmul.mubr.msk.bf16.vlgmr.msra.gmra.mrb[12].mxu1 %vm293_vm3, %v387_v29 }
 0x204   :  { %582 = vmatpush1.bf16.msra.mxu1 %v2424_v8  ;;  %613 = vmatprep.mubr.bf16.mxu1 %v2338_v1 }
 0x205   :  { %583 = vmatprep.subr.bf16.mxu1 %v2430_v9 }
 0x208   :  { %584 = vmatpush1.bf16.msra.mxu1 %v2439_v10 }
 0x209   :  { %585 = vmatprep.subr.bf16.mxu1 %v2447_v11 }
 0x20c   :  { %586 = vmatpush1.bf16.msra.mxu1 %v2461_v14 }
 0x20d   :  { %587 = vmatprep.subr.bf16.mxu1 %v2467_v15 }
 0x210   :  { %588 = vmatpush1.bf16.msra.mxu1 %v2476_v16 }
 0x211   :  { %759 = vmatprep.subr.bf16.mxu1 %v2416_v6 }
 0x2d6   :  { %v425_v30 = vpop.f32.mrb[12].mxu1 }
 0x2d7   :  { %v432_v32 = vadd.f32 %v425_v30, %v382_v60  ;;  %v427_v33 = vpop.f32.mrb[13].mxu1 }
 0x2d8   :  { %v433_v35 = vadd.f32 %v427_v33, %v383_v0  ;;  %v429_v37 = vpop.f32.mrb[14].mxu1 }
 0x2d9   :  { %v2008_v38 = vmul.f32 -1.442695, %v432_v32  ;;  %v430_v41 = vpop.f32.mrb[15].mxu1 }
 0x2da   :  { %v2009_v55 = vmul.f32 -1.442695, %v433_v35 }
 0x2db   :  { %2158 = vpow2.f32 %v2008_v38 }
 0x2dc   :  { %2160 = vtanh.f32 %v433_v35 }
 0x2e5   :  { %v2159_v43 = vpop.eup %2158 }
 0x2e6   :  { %v437_v44 = vadd.f32 1.0, %v2159_v43  ;;  %v2161_v49 = vpop.eup %2160 }
 0x2e8   :  { %2162 = vrcp.f32 %v437_v44 }
 0x2e9   :  { %2164 = vpow2.f32 %v2009_v55 }
 0x2f2   :  { %v2163_v50 = vpop.eup %2162 }
 0x2f3   :  { %v448_v54 = vmul.f32 %v2163_v50, %v2161_v49  ;;  %v2165_v58 = vpop.eup %2164  ;;  %v447_v60 = vmul.f32 %v2163_v50, %v359_v59 }
 0x2f4   :  { %v444_v3 = vadd.f32 1.0, %v2165_v58 }
 0x2f5   :  { %450 = vrot.lane.b32.xlu1 %v448_v54, %s2339_s3 }
 0x2f6   :  { %2166 = vrcp.f32 %v444_v3 }
 0x300   :  { %v2167_v27 = vpop.eup %2166 }
 0x367   :  { %v451_v12 = vpop.permute.xlu1 %450 }
 0x368   :  { %v453_v0 = vadd.f32 %v451_v12, %v447_v60 }
 0x36a   :  { %2168 = vtanh.f32 %v453_v0 }
 0x374   :  { %v2169_v29 = vpop.eup %2168 }
 0x375   :  { %v2630_v30 = vmul.f32 %v2169_v29, %v2167_v27 }
 0x377   :  { %v479_v32 = vpack.c.bf16 %v2630_v30, %v2630_v30 }
 0x379   :  { %481 = vrot.lane.b32.xlu1 %v479_v32, %s2339_s3 }
 0x3eb   :  { %v482_v33 = vpop.permute.xlu1 %481 }
 0x3ec   :  { %2010 = vmatmul.mubr.msk.bf16.vlgmr.msra.gmra.mrb[8].mxu0 %vm293_vm3, %v482_v33 }
 0x3ed   :  { %671 = vmatpush1.bf16.msra.mxu0 %v2424_v8  ;;  %702 = vmatprep.mubr.bf16.mxu0 %v2338_v1 }
 0x3ee   :  { %672 = vmatprep.subr.bf16.mxu0 %v2430_v9 }
 0x3f1   :  { %673 = vmatpush1.bf16.msra.mxu0 %v2439_v10 }
 0x3f2   :  { %674 = vmatprep.subr.bf16.mxu0 %v2447_v11 }
 0x3f5   :  { %675 = vmatpush1.bf16.msra.mxu0 %v2461_v14 }
 0x3f6   :  { %676 = vmatprep.subr.bf16.mxu0 %v2467_v15 }
 0x3f9   :  { %677 = vmatpush1.bf16.msra.mxu0 %v2476_v16 }
 0x3fa   :  { %848 = vmatprep.subr.bf16.mxu0 %v2416_v6 }
 0x4bf   :  { %v520_v59 = vpop.f32.mrb[8].mxu0 }
 0x4c0   :  { %v527_v35 = vadd.f32 %v520_v59, %v477_v61  ;;  %v522_v37 = vpop.f32.mrb[9].mxu0 }
 0x4c1   :  { %v528_v38 = vadd.f32 %v522_v37, %v478_v2  ;;  %v524_v41 = vpop.f32.mrb[10].mxu0 }
 0x4c2   :  { %v2011_v43 = vmul.f32 -1.442695, %v527_v35  ;;  %v525_v44 = vpop.f32.mrb[11].mxu0 }
 0x4c3   :  { %v2012_v61 = vmul.f32 -1.442695, %v528_v38 }
 0x4c4   :  { %2170 = vpow2.f32 %v2011_v43 }
 0x4c5   :  { %2172 = vtanh.f32 %v528_v38 }
 0x4ce   :  { %v2171_v49 = vpop.eup %2170 }
 0x4cf   :  { %v532_v50 = vadd.f32 1.0, %v2171_v49  ;;  %v2173_v54 = vpop.eup %2172 }
 0x4d1   :  { %2174 = vrcp.f32 %v532_v50 }
 0x4d2   :  { %2176 = vpow2.f32 %v2012_v61 }
 0x4db   :  { %v2175_v55 = vpop.eup %2174 }
 0x4dc   :  { %v543_v58 = vmul.f32 %v2175_v55, %v2173_v54  ;;  %v2177_v3 = vpop.eup %2176  ;;  %v542_v12 = vmul.f32 %v2175_v55, %v453_v0 }
 0x4dd   :  { %v539_v60 = vadd.f32 1.0, %v2177_v3 }
 0x4de   :  { %545 = vrot.lane.b32.xlu0 %v543_v58, %s2339_s3 }
 0x4df   :  { %2178 = vrcp.f32 %v539_v60 }
 0x4e9   :  { %v2179_v29 = vpop.eup %2178 }
 0x550   :  { %v546_v27 = vpop.permute.xlu0 %545 }
 0x551   :  { %v548_v2 = vadd.f32 %v546_v27, %v542_v12 }
 0x553   :  { %2180 = vtanh.f32 %v548_v2 }
 0x55d   :  { %v2181_v32 = vpop.eup %2180 }
 0x55e   :  { %v2656_v33 = vmul.f32 %v2181_v32, %v2179_v29 }
 0x560   :  { %v574_v59 = vpack.c.bf16 %v2656_v33, %v2656_v33 }
 0x562   :  { %576 = vrot.lane.b32.xlu1 %v574_v59, %s2339_s3 }
 0x5d4   :  { %v577_v35 = vpop.permute.xlu1 %576 }
 0x5d5   :  { %2013 = vmatmul.mubr.msk.bf16.vlgmr.msra.gmra.mrb[16].mxu1 %vm293_vm3, %v577_v35 }
 0x5d6   :  { %760 = vmatpush1.bf16.msra.mxu1 %v2424_v8  ;;  %791 = vmatprep.mubr.bf16.mxu1 %v2338_v1 }
 0x5d7   :  { %761 = vmatprep.subr.bf16.mxu1 %v2430_v9 }
 0x5da   :  { %762 = vmatpush1.bf16.msra.mxu1 %v2439_v10 }
 0x5db   :  { %763 = vmatprep.subr.bf16.mxu1 %v2447_v11 }
 0x5de   :  { %764 = vmatpush1.bf16.msra.mxu1 %v2461_v14 }
 0x5df   :  { %765 = vmatprep.subr.bf16.mxu1 %v2467_v15 }
 0x5e2   :  { %766 = vmatpush1.bf16.msra.mxu1 %v2476_v16 }
 0x5e3   :  { %937 = vmatprep.subr.bf16.mxu1 %v2416_v6 }
 0x6a8   :  { %v615_v0 = vpop.f32.mrb[16].mxu1 }
 0x6a9   :  { %v622_v37 = vadd.f32 %v615_v0, %v572_v4  ;;  %v617_v38 = vpop.f32.mrb[17].mxu1 }
 0x6aa   :  { %v623_v41 = vadd.f32 %v617_v38, %v573_v13  ;;  %v619_v43 = vpop.f32.mrb[18].mxu1 }
 0x6ab   :  { %v2014_v44 = vmul.f32 -1.442695, %v622_v37  ;;  %v620_v49 = vpop.f32.mrb[19].mxu1 }
 0x6ac   :  { %v2015_v4 = vmul.f32 -1.442695, %v623_v41 }
 0x6ad   :  { %2182 = vpow2.f32 %v2014_v44 }
 0x6ae   :  { %2184 = vtanh.f32 %v623_v41 }
 0x6b7   :  { %v2183_v50 = vpop.eup %2182 }
 0x6b8   :  { %v627_v6 = vadd.f32 1.0, %v2183_v50  ;;  %v2185_v54 = vpop.eup %2184 }
 0x6ba   :  { %2186 = vrcp.f32 %v627_v6 }
 0x6bb   :  { %2188 = vpow2.f32 %v2015_v4 }
 0x6c4   :  { %v2187_v55 = vpop.eup %2186 }
 0x6c5   :  { %v638_v58 = vmul.f32 %v2187_v55, %v2185_v54  ;;  %v2189_v61 = vpop.eup %2188  ;;  %v637_v60 = vmul.f32 %v2187_v55, %v548_v2 }
 0x6c6   :  { %v634_v3 = vadd.f32 1.0, %v2189_v61 }
 0x6c7   :  { %640 = vrot.lane.b32.xlu0 %v638_v58, %s2339_s3 }
 0x6c8   :  { %2190 = vrcp.f32 %v634_v3 }
 0x6d2   :  { %v2191_v27 = vpop.eup %2190 }
 0x739   :  { %v641_v12 = vpop.permute.xlu0 %640 }
 0x73a   :  { %v643_v13 = vadd.f32 %v641_v12, %v637_v60 }
 0x73c   :  { %2192 = vtanh.f32 %v643_v13 }
 0x746   :  { %v2193_v29 = vpop.eup %2192 }
 0x747   :  { %v2682_v32 = vmul.f32 %v2193_v29, %v2191_v27 }
 0x749   :  { %v663_v59 = vpack.c.bf16 %v2682_v32, %v2682_v32 }
 0x74b   :  { %665 = vrot.lane.b32.xlu1 %v663_v59, %s2339_s3 }
 0x7bd   :  { %v666_v35 = vpop.permute.xlu1 %665 }
 0x7be   :  { %2016 = vmatmul.mubr.msk.bf16.vlgmr.msra.gmra.mrb[12].mxu0 %vm293_vm3, %v666_v35 }
 0x7bf   :  { %849 = vmatpush1.bf16.msra.mxu0 %v2424_v8  ;;  %880 = vmatprep.mubr.bf16.mxu0 %v2338_v1 }
 0x7c0   :  { %850 = vmatprep.subr.bf16.mxu0 %v2430_v9 }
 0x7c3   :  { %851 = vmatpush1.bf16.msra.mxu0 %v2439_v10 }
 0x7c4   :  { %852 = vmatprep.subr.bf16.mxu0 %v2447_v11 }
 0x7c7   :  { %853 = vmatpush1.bf16.msra.mxu0 %v2461_v14 }
 0x7c8   :  { %854 = vmatprep.subr.bf16.mxu0 %v2467_v15 }
 0x7cb   :  { %855 = vmatpush1.bf16.msra.mxu0 %v2476_v16 }
 0x891   :  { %v704_v2 = vpop.f32.mrb[12].mxu0 }
 0x892   :  { %v711_v0 = vadd.f32 %v704_v2, %v661_v5  ;;  %v706_v37 = vpop.f32.mrb[13].mxu0 }
 0x893   :  { %v712_v38 = vadd.f32 %v706_v37, %v662_v17  ;;  %v708_v41 = vpop.f32.mrb[14].mxu0 }
 0x894   :  { %v2017_v43 = vmul.f32 -1.442695, %v711_v0  ;;  %v709_v44 = vpop.f32.mrb[15].mxu0 }
 0x895   :  { %v2018_v28 = vmul.f32 -1.442695, %v712_v38 }
 0x896   :  { %2194 = vpow2.f32 %v2017_v43 }
 0x897   :  { %2196 = vtanh.f32 %v712_v38 }
 0x8a0   :  { %v2195_v49 = vpop.eup %2194 }
 0x8a1   :  { %v716_v50 = vadd.f32 1.0, %v2195_v49  ;;  %v2197_v6 = vpop.eup %2196 }
 0x8a3   :  { %2198 = vrcp.f32 %v716_v50 }
 0x8a4   :  { %2200 = vpow2.f32 %v2018_v28 }
 0x8ad   :  { %v2199_v54 = vpop.eup %2198 }
 0x8ae   :  { %v727_v55 = vmul.f32 %v2199_v54, %v2197_v6  ;;  %v2201_v56 = vpop.eup %2200  ;;  %v726_v58 = vmul.f32 %v2199_v54, %v643_v13 }
 0x8af   :  { %v723_v5 = vadd.f32 1.0, %v2201_v56 }
 0x8b0   :  { %729 = vrot.lane.b32.xlu0 %v727_v55, %s2339_s3 }
 0x8b1   :  { %2202 = vrcp.f32 %v723_v5 }
 0x8bb   :  { %v2203_v17 = vpop.eup %2202 }
 0x922   :  { %v730_v31 = vpop.permute.xlu0 %729 }
 0x923   :  { %v732_v62 = vadd.f32 %v730_v31, %v726_v58 }
 0x925   :  { %2204 = vtanh.f32 %v732_v62 }
 0x92f   :  { %v2205_v4 = vpop.eup %2204 }
 0x930   :  { %v2707_v61 = vmul.f32 %v2205_v4, %v2203_v17 }
 0x932   :  { %v752_v3 = vpack.c.bf16 %v2707_v61, %v2707_v61 }
 0x934   :  { %754 = vrot.lane.b32.xlu1 %v752_v3, %s2339_s3 }
 0x9a6   :  { %v755_v60 = vpop.permute.xlu1 %754 }
 0x9a7   :  { %2019 = vmatmul.mubr.msk.bf16.vlgmr.msra.gmra.mrb[20].mxu1 %vm293_vm3, %v755_v60 }
 0x9a8   :  { %938 = vmatpush1.bf16.msra.mxu1 %v2424_v8  ;;  %969 = vmatprep.mubr.bf16.mxu1 %v2338_v1 }
 0x9a9   :  { %939 = vmatprep.subr.bf16.mxu1 %v2430_v9 }
 0x9ac   :  { %940 = vmatpush1.bf16.msra.mxu1 %v2439_v10 }
 0x9ad   :  { %941 = vmatprep.subr.bf16.mxu1 %v2447_v11 }
 0x9b0   :  { %942 = vmatpush1.bf16.msra.mxu1 %v2461_v14 }
 0x9b1   :  { %943 = vmatprep.subr.bf16.mxu1 %v2467_v15 }
 0x9b4   :  { %944 = vmatpush1.bf16.msra.mxu1 %v2476_v16 }
 0xa7a   :  { %v793_v12 = vpop.f32.mrb[20].mxu1 }
 0xa7b   :  { %v800_v8 = vadd.f32 %v793_v12, %v750_v7  ;;  %v795_v13 = vpop.f32.mrb[21].mxu1 }
 0xa7c   :  { %v801_v9 = vadd.f32 %v795_v13, %v751_v20  ;;  %v797_v10 = vpop.f32.mrb[22].mxu1 }
 0xa7d   :  { %v2020_v11 = vmul.f32 -1.442695, %v800_v8  ;;  %v798_v14 = vpop.f32.mrb[23].mxu1 }
 0xa7e   :  { %v2021_v34 = vmul.f32 -1.442695, %v801_v9 }
 0xa7f   :  { %2206 = vpow2.f32 %v2020_v11 }
 0xa80   :  { %2208 = vtanh.f32 %v801_v9 }
 0xa89   :  { %v2207_v15 = vpop.eup %2206 }
 0xa8a   :  { %v805_v16 = vadd.f32 1.0, %v2207_v15  ;;  %v2209_v27 = vpop.eup %2208 }
 0xa8c   :  { %2210 = vrcp.f32 %v805_v16 }
 0xa8d   :  { %2212 = vpow2.f32 %v2021_v34 }
 0xa96   :  { %v2211_v29 = vpop.eup %2210 }
 0xa97   :  { %v816_v59 = vmul.f32 %v2211_v29, %v2209_v27  ;;  %v2213_v47 = vpop.eup %2212  ;;  %v815_v35 = vmul.f32 %v2211_v29, %v732_v62 }
 0xa98   :  { %v812_v7 = vadd.f32 1.0, %v2213_v47 }
 0xa99   :  { %818 = vrot.lane.b32.xlu0 %v816_v59, %s2339_s3 }
 0xa9a   :  { %2214 = vrcp.f32 %v812_v7 }
 0xaa4   :  { %v2215_v20 = vpop.eup %2214 }
 0xb0b   :  { %v819_v39 = vpop.permute.xlu0 %818 }
 0xb0c   :  { %v821_v52 = vadd.f32 %v819_v39, %v815_v35 }
 0xb0e   :  { %2216 = vtanh.f32 %v821_v52 }
 0xb18   :  { %v2217_v2 = vpop.eup %2216 }
 0xb19   :  { %v2732_v0 = vmul.f32 %v2217_v2, %v2215_v20  ;;  %v2127_v20 = vld [vmem:[%s3160_s5 + $0x14] ss:$8 sps:$4 sm:$0xff]   ;;  %v2125_v2 = vld [vmem:[%s3160_s5 + $0x10] ss:$8 sps:$4 sm:$0xff]  }
 0xb1b   :  { %v841_v37 = vpack.c.bf16 %v2732_v0, %v2732_v0 }
 0xb1d   :  { %843 = vrot.lane.b32.xlu1 %v841_v37, %s2339_s3 }
 0xb8f   :  { %v844_v38 = vpop.permute.xlu1 %843 }
 0xb90   :  { %2022 = vmatmul.mubr.msk.bf16.vlgmr.msra.gmra.mrb[16].mxu0 %vm293_vm3, %v844_v38 }
 0xb91   :  { %1108 = vmatprep.mubr.bf16.mxu0 %v2338_v1 }
 0xc63   :  { %v882_v41 = vpop.f32.mrb[16].mxu0 }
 0xc64   :  { %v889_v43 = vadd.f32 %v882_v41, %v839_v22  ;;  %v884_v44 = vpop.f32.mrb[17].mxu0 }
 0xc65   :  { %v890_v49 = vadd.f32 %v884_v44, %v840_v23  ;;  %v886_v50 = vpop.f32.mrb[18].mxu0  ;;  %v2818_v44 = vld [vmem:[%s3162_s6 + $0x4] ss:$8 sps:$4 sm:$0xff]  }
 0xc66   :  { %v2023_v6 = vmul.f32 -1.442695, %v889_v43  ;;  %v887_v54 = vpop.f32.mrb[19].mxu0  ;;  %v2130_v43 = vld [vmem:[%s3161_s4 + $0x4] ss:$8 sps:$4 sm:$0xff]   ;;  %1352 = vmatprep.subr.bf16.mxu1 %v2818_v44 }
 0xc67   :  { %v2024_v36 = vmul.f32 -1.442695, %v890_v49  ;;  %v2847_v50 = vld [vmem:[%s3162_s6 + $0x20] ss:$8 sps:$4 sm:$0xff]   ;;  %v2860_v54 = vld [vmem:[%s3162_s6 + $0x30] ss:$8 sps:$4 sm:$0xff]  }
 0xc68   :  { %2218 = vpow2.f32 %v2023_v6  ;;  %v2853_v6 = vld [vmem:[%s3162_s6 + $0x34] ss:$8 sps:$4 sm:$0xff]  }
 0xc69   :  { %2220 = vtanh.f32 %v890_v49  ;;  %v2823_v49 = vld [vmem:[%s3162_s6] ss:$8 sps:$4 sm:$0xff]  }
 0xc72   :  { %v2219_v55 = vpop.eup %2218 }
 0xc73   :  { %v894_v28 = vadd.f32 1.0, %v2219_v55  ;;  %v2221_v56 = vpop.eup %2220 }
 0xc75   :  { %2222 = vrcp.f32 %v894_v28 }
 0xc76   :  { %2224 = vpow2.f32 %v2024_v36  ;;  %v2128_v36 = vld [vmem:[%s3161_s4] ss:$8 sps:$4 sm:$0xff]  }
 0xc7f   :  { %v2223_v5 = vpop.eup %2222 }
 0xc80   :  { %v905_v58 = vmul.f32 %v2223_v5, %v2221_v56  ;;  %v2225_v48 = vpop.eup %2224  ;;  %v904_v31 = vmul.f32 %v2223_v5, %v821_v52  ;;  %v2124_v52 = vld [vmem:[%s3160_s5 + $0x4] ss:$8 sps:$4 sm:$0xff]  }
 0xc81   :  { %v901_v22 = vadd.f32 1.0, %v2225_v48  ;;  %1076 = vmatprep.subr.bf16.mxu0 %v2124_v52 }
 0xc82   :  { %907 = vrot.lane.b32.xlu0 %v905_v58, %s2339_s3 }
 0xc83   :  { %2226 = vrcp.f32 %v901_v22  ;;  %v2133_v22 = vld [vmem:[%s3161_s4 + $0x14] ss:$8 sps:$4 sm:$0xff]  }
 0xc8d   :  { %v2227_v23 = vpop.eup %2226 }
 0xcf4   :  { %v908_v40 = vpop.permute.xlu0 %907 }
 0xcf5   :  { %v910_v53 = vadd.f32 %v908_v40, %v904_v31  ;;  %v2131_v40 = vld [vmem:[%s3161_s4 + $0x10] ss:$8 sps:$4 sm:$0xff]  }
 0xcf7   :  { %2228 = vtanh.f32 %v910_v53 }
 0xd01   :  { %v2229_v62 = vpop.eup %2228 }
 0xd02   :  { %v912_v17 = vmul.f32 %v2229_v62, %v2227_v23 }
 0xd04   :  { %v930_v4 = vpack.c.bf16 %v912_v17, %v912_v17 }
 0xd06   :  { %932 = vrot.lane.b32.xlu1 %v930_v4, %s2339_s3 }
 0xd0a   :  { %919 = vrot.lane.b32.xlu1 %v912_v17, %s2340_s24 }
 0xd0e   :  { %741 = vrot.lane.b32.xlu1 %v2707_v61, %s2340_s24 }
 0xd12   :  { %557 = vrot.lane.b32.xlu1 %v2656_v33, %s2340_s24 }
 0xd16   :  { %367 = vrot.lane.b32.xlu1 %v2614_v26, %s2340_s24 }
 0xd1a   :  { %363 = vrot.lane.b32.xlu1 %v2614_v26, %s2339_s3 }
 0xd1e   :  { %552 = vrot.lane.b32.xlu1 %v2656_v33, %s2339_s3 }
 0xd22   :  { %736 = vrot.lane.b32.xlu1 %v2707_v61, %s2339_s3 }
 0xd26   :  { %914 = vrot.lane.b32.xlu1 %v912_v17, %s2339_s3 }
 0xd78   :  { %v933_v3 = vpop.permute.xlu1 %932 }
 0xd79   :  { %2025 = vmatmul.mubr.msk.bf16.vlgmr.msra.gmra.mrb[24].mxu1 %vm293_vm3, %v933_v3 }
 0xd7a   :  { %1384 = vmatprep.mubr.bf16.mxu1 %v2338_v1  ;;  %1353 = vmatpush1.bf16.msra.mxu1 %v2823_v49 }
 0xd7c   :  { %v920_v60 = vpop.permute.xlu1 %919 }
 0xd7d   :  { %923 = vst.msk [vmem:[#allocation4 + $0x8] sm:$0xff] %vm131_vm0, %v920_v60 }
 0xd80   :  { %v742_v12 = vpop.permute.xlu1 %741 }
 0xd81   :  { %745 = vst.msk [vmem:[#allocation4 + $0x18] sm:$0xff] %vm131_vm0, %v742_v12 }
 0xd84   :  { %v558_v26 = vpop.permute.xlu1 %557  ;;  %v1029_v58 = vld [vmem:[#allocation4 + $0x8] sm:$0xff] }
 0xd85   :  { %561 = vst.msk [vmem:[#allocation4 + $0x28] sm:$0xff] %vm131_vm0, %v558_v26 }
 0xd88   :  { %v368_v33 = vpop.permute.xlu1 %367  ;;  %v1031_v62 = vld [vmem:[#allocation4 + $0x18] sm:$0xff] }
 0xd89   :  { %371 = vst.msk [vmem:[#allocation4 + $0x38] sm:$0xff] %vm131_vm0, %v368_v33 }
 0xd8c   :  { %v364_v61 = vpop.permute.xlu1 %363  ;;  %v1033_v12 = vld [vmem:[#allocation4 + $0x28] sm:$0xff] }
 0xd8d   :  { %366 = vst.msk [vmem:[#allocation3] sm:$0xff] %vm131_vm0, %v364_v61 }
 0xd90   :  { %v553_v8 = vpop.permute.xlu1 %552 }
 0xd91   :  { %556 = vst.msk [vmem:[#allocation3 + $0x10] sm:$0xff] %vm131_vm0, %v553_v8  ;;  %v1035_v8 = vld [vmem:[#allocation4 + $0x38] sm:$0xff] }
 0xd94   :  { %v737_v13 = vpop.permute.xlu1 %736 }
 0xd95   :  { %740 = vst.msk [vmem:[#allocation3 + $0x20] sm:$0xff] %vm131_vm0, %v737_v13 }
 0xd98   :  { %v915_v9 = vpop.permute.xlu1 %914 }
 0xd99   :  { %918 = vst.msk [vmem:[#allocation3 + $0x30] sm:$0xff] %vm131_vm0, %v915_v9 }
 0xe4c   :  { %v971_v10 = vpop.f32.mrb[24].mxu1 }
 0xe4d   :  { %v978_v11 = vadd.f32 %v971_v10, %v928_v24  ;;  %v973_v14 = vpop.f32.mrb[25].mxu1  ;;  %v1012_v10 = vld [vmem:[#allocation3] sm:$0xff] }
 0xe4e   :  { %v979_v15 = vadd.f32 %v973_v14, %v929_v25  ;;  %v975_v16 = vpop.f32.mrb[26].mxu1  ;;  %v2122_v25 = vld [vmem:[%s3160_s5] ss:$8 sps:$4 sm:$0xff]  }
 0xe4f   :  { %v2026_v27 = vmul.f32 -1.442695, %v978_v11  ;;  %v976_v29 = vpop.f32.mrb[27].mxu1  ;;  %1077 = vmatpush1.bf16.msra.mxu0 %v2122_v25 }
 0xe50   :  { %v2027_v46 = vmul.f32 -1.442695, %v979_v15  ;;  %1078 = vmatprep.subr.bf16.mxu0 %v2127_v20  ;;  %v1016_v29 = vld [vmem:[#allocation3 + $0x20] sm:$0xff] }
 0xe51   :  { %2230 = vpow2.f32 %v2026_v27 }
 0xe52   :  { %2232 = vtanh.f32 %v979_v15  ;;  %v1014_v15 = vld [vmem:[#allocation3 + $0x10] sm:$0xff] }
 0xe53   :  { %1079 = vmatpush1.bf16.msra.mxu0 %v2125_v2 }
 0xe54   :  { %1181 = vmatprep.subr.bf16.mxu0 %v2130_v43 }
 0xe5b   :  { %v2231_v59 = vpop.eup %2230 }
 0xe5c   :  { %v983_v34 = vadd.f32 1.0, %v2231_v59  ;;  %v2233_v47 = vpop.eup %2232 }
 0xe5e   :  { %2234 = vrcp.f32 %v983_v34 }
 0xe5f   :  { %2236 = vpow2.f32 %v2027_v46 }
 0xe68   :  { %v2235_v7 = vpop.eup %2234 }
 0xe69   :  { %v994_v35 = vmul.f32 %v2235_v7, %v2233_v47  ;;  %v2237_v57 = vpop.eup %2236  ;;  %v993_v39 = vmul.f32 %v2235_v7, %v910_v53  ;;  %v1018_v47 = vld [vmem:[#allocation3 + $0x30] sm:$0xff] }
 0xe6a   :  { %v990_v24 = vadd.f32 1.0, %v2237_v57 }
 0xe6b   :  { %996 = vrot.lane.b32.xlu0 %v994_v35, %s2339_s3 }
 0xe6c   :  { %2238 = vrcp.f32 %v990_v24 }
 0xe76   :  { %v2239_v37 = vpop.eup %2238 }
 0xedd   :  { %v997_v51 = vpop.permute.xlu0 %996 }
 0xede   :  { %v999_v63 = vadd.f32 %v997_v51, %v993_v39  ;;  %v1254_v39 = vld [vmem:[%s3163_s7] sm:$0x3] }
 0xedf   :  { %v1263_v52 = vrot.slane %v1254_v39, %v87_v21 }
 0xee0   :  { %2240 = vtanh.f32 %v999_v63  ;;  %v1259_v63 = vrot.slane %v1254_v39, %v83_v19 }
 0xeea   :  { %v2241_v38 = vpop.eup %2240 }
 0xeeb   :  { %v1001_v41 = vmul.f32 %v2241_v38, %v2239_v37 }
 0xeed   :  { %1008 = vrot.lane.b32.xlu0 %v1001_v41, %s2340_s24 }
 0xef1   :  { %830 = vrot.lane.b32.xlu0 %v2732_v0, %s2340_s24 }
 0xef5   :  { %652 = vrot.lane.b32.xlu0 %v2682_v32, %s2340_s24 }
 0xef9   :  { %462 = vrot.lane.b32.xlu0 %v2630_v30, %s2340_s24 }
 0xefd   :  { %457 = vrot.lane.b32.xlu0 %v2630_v30, %s2339_s3  ;;  %v2829_v30 = vld [vmem:[%s3162_s6 + $0x14] ss:$8 sps:$4 sm:$0xff]  }
 0xefe   :  { %1354 = vmatprep.subr.bf16.mxu1 %v2829_v30 }
 0xf01   :  { %647 = vrot.lane.b32.xlu0 %v2682_v32, %s2339_s3  ;;  %v2836_v32 = vld [vmem:[%s3162_s6 + $0x10] ss:$8 sps:$4 sm:$0xff]  }
 0xf02   :  { %1355 = vmatpush1.bf16.msra.mxu1 %v2836_v32 }
 0xf05   :  { %825 = vrot.lane.b32.xlu0 %v2732_v0, %s2339_s3  ;;  %v2841_v0 = vld [vmem:[%s3162_s6 + $0x24] ss:$8 sps:$4 sm:$0xff]  }
 0xf06   :  { %1356 = vmatprep.subr.bf16.mxu1 %v2841_v0 }
 0xf07   :  { %1357 = vmatpush1.bf16.msra.mxu1 %v2847_v50 }
 0xf08   :  { %1358 = vmatprep.subr.bf16.mxu1 %v2853_v6 }
 0xf09   :  { %1003 = vrot.lane.b32.xlu0 %v1001_v41, %s2339_s3 }
 0xf0b   :  { %1359 = vmatpush1.bf16.msra.mxu1 %v2860_v54 }
 0xf0c   :  { %1430 = vmatprep.subr.bf16.mxu1 %v2818_v44 }
 0xf0e   :  { %1385 = vmatmul.mubr.bf16.vlgmr.msra.gmra.mrb[28].mxu1 %v2338_v1 }
 0xf0f   :  { %1431 = vmatpush1.bf16.msra.mxu1 %v2823_v49  ;;  %1462 = vmatprep.mubr.bf16.mxu1 %v2338_v1 }
 0xf10   :  { %1432 = vmatprep.subr.bf16.mxu1 %v2829_v30 }
 0xf13   :  { %1433 = vmatpush1.bf16.msra.mxu1 %v2836_v32 }
 0xf14   :  { %1434 = vmatprep.subr.bf16.mxu1 %v2841_v0 }
 0xf17   :  { %1435 = vmatpush1.bf16.msra.mxu1 %v2847_v50 }
 0xf18   :  { %1436 = vmatprep.subr.bf16.mxu1 %v2853_v6 }
 0xf1b   :  { %1437 = vmatpush1.bf16.msra.mxu1 %v2860_v54 }
 0xf1c   :  { %1508 = vmatprep.subr.bf16.mxu1 %v2818_v44 }
 0xf5f   :  { %v1009_v55 = vpop.permute.xlu0 %1008 }
 0xf60   :  { %1011 = vst.msk [vmem:[#allocation4] sm:$0xff] %vm131_vm0, %v1009_v55 }
 0xf63   :  { %v831_v28 = vpop.permute.xlu0 %830 }
 0xf64   :  { %834 = vst.msk [vmem:[#allocation4 + $0x10] sm:$0xff] %vm131_vm0, %v831_v28 }
 0xf67   :  { %v653_v56 = vpop.permute.xlu0 %652  ;;  %v1028_v5 = vld [vmem:[#allocation4] sm:$0xff] }
 0xf68   :  { %656 = vst.msk [vmem:[#allocation4 + $0x20] sm:$0xff] %vm131_vm0, %v653_v56  ;;  %v1036_v48 = vpack.c.bf16 %v1029_v58, %v1028_v5 }
 0xf6a   :  { %2032 = vmatmul.mubr.msk.bf16.vlgmr.msra.gmra.mrb[20].mxu0 %vm131_vm0, %v1036_v48 }
 0xf6b   :  { %1182 = vmatpush1.bf16.msra.mxu0 %v2128_v36  ;;  %v463_v31 = vpop.permute.xlu0 %462  ;;  %1118 = vmatprep.mubr.bf16.mxu0 %v2338_v1  ;;  %v1030_v53 = vld [vmem:[#allocation4 + $0x10] sm:$0xff] }
 0xf6c   :  { %466 = vst.msk [vmem:[#allocation4 + $0x30] sm:$0xff] %vm131_vm0, %v463_v31  ;;  %1183 = vmatprep.subr.bf16.mxu0 %v2133_v22  ;;  %v1037_v17 = vpack.c.bf16 %v1031_v62, %v1030_v53 }
 0xf6f   :  { %v458_v23 = vpop.permute.xlu0 %457  ;;  %1184 = vmatpush1.bf16.msra.mxu0 %v2131_v40  ;;  %v1032_v3 = vld [vmem:[#allocation4 + $0x20] sm:$0xff] }
 0xf70   :  { %461 = vst.msk [vmem:[#allocation3 + $0x8] sm:$0xff] %vm131_vm0, %v458_v23  ;;  %1586 = vmatprep.subr.bf16.mxu0 %v2818_v44  ;;  %v1038_v26 = vpack.c.bf16 %v1033_v12, %v1032_v3 }
 0xf72   :  { %2033 = vmatmul.mubr.msk.bf16.gmra.mrb[24].mxu0 %vm131_vm0, %v1037_v17 }
 0xf73   :  { %v648_v4 = vpop.permute.xlu0 %647  ;;  %1128 = vmatprep.mubr.bf16.mxu0 %v2338_v1  ;;  %v1034_v61 = vld [vmem:[#allocation4 + $0x30] sm:$0xff] }
 0xf74   :  { %651 = vst.msk [vmem:[#allocation3 + $0x18] sm:$0xff] %vm131_vm0, %v648_v4  ;;  %v1039_v13 = vpack.c.bf16 %v1035_v8, %v1034_v61 }
 0xf77   :  { %v826_v60 = vpop.permute.xlu0 %825  ;;  %v1013_v9 = vld [vmem:[#allocation3 + $0x8] sm:$0xff] }
 0xf78   :  { %829 = vst.msk [vmem:[#allocation3 + $0x28] sm:$0xff] %vm131_vm0, %v826_v60  ;;  %v1020_v11 = vpack.c.bf16 %v1013_v9, %v1012_v10 }
 0xf7a   :  { %2034 = vmatmul.mubr.msk.bf16.gmra.mrb[28].mxu0 %vm131_vm0, %v1038_v26 }
 0xf7b   :  { %v1004_v33 = vpop.permute.xlu0 %1003  ;;  %1138 = vmatprep.mubr.bf16.mxu0 %v2338_v1  ;;  %v1015_v14 = vld [vmem:[#allocation3 + $0x18] sm:$0xff] }
 0xf7c   :  { %1007 = vst.msk [vmem:[#allocation3 + $0x38] sm:$0xff] %vm131_vm0, %v1004_v33  ;;  %v1021_v16 = vpack.c.bf16 %v1015_v14, %v1014_v15 }
 0xf7f   :  { %v1017_v27 = vld [vmem:[#allocation3 + $0x28] sm:$0xff] }
 0xf80   :  { %v1022_v59 = vpack.c.bf16 %v1017_v27, %v1016_v29 }
 0xf82   :  { %2035 = vmatmul.mubr.msk.bf16.gmra.mrb[32].mxu0 %vm131_vm0, %v1039_v13 }
 0xf83   :  { %1213 = vmatprep.mubr.bf16.mxu0 %v2338_v1  ;;  %v1019_v34 = vld [vmem:[#allocation3 + $0x38] sm:$0xff] }
 0xf84   :  { %v1023_v7 = vpack.c.bf16 %v1019_v34, %v1018_v47 }
 0xf8a   :  { %2040 = vmatmul.mubr.msk.bf16.vlgmr.msra.gmra.mrb[20].mxu0 %vm131_vm0, %v1020_v11 }
 0xf8b   :  { %1223 = vmatprep.mubr.bf16.mxu0 %v2338_v1  ;;  %1587 = vmatpush1.bf16.msra.mxu0 %v2823_v49 }
 0xf8c   :  { %1588 = vmatprep.subr.bf16.mxu0 %v2829_v30 }
 0xf8f   :  { %1589 = vmatpush1.bf16.msra.mxu0 %v2836_v32 }
 0xf90   :  { %1590 = vmatprep.subr.bf16.mxu0 %v2841_v0 }
 0xf92   :  { %2041 = vmatmul.mubr.msk.bf16.gmra.mrb[24].mxu0 %vm131_vm0, %v1021_v16 }
 0xf93   :  { %1233 = vmatprep.mubr.bf16.mxu0 %v2338_v1  ;;  %1591 = vmatpush1.bf16.msra.mxu0 %v2847_v50 }
 0xf94   :  { %1592 = vmatprep.subr.bf16.mxu0 %v2853_v6 }
 0xf97   :  { %1593 = vmatpush1.bf16.msra.mxu0 %v2860_v54 }
 0xf98   :  { %1734 = vmatprep.subr.bf16.mxu0 %v2818_v44 }
 0xf9a   :  { %2042 = vmatmul.mubr.msk.bf16.gmra.mrb[28].mxu0 %vm131_vm0, %v1022_v59 }
 0xf9b   :  { %1243 = vmatprep.mubr.bf16.mxu0 %v2338_v1 }
 0xfa2   :  { %2043 = vmatmul.mubr.msk.bf16.gmra.mrb[32].mxu0 %vm131_vm0, %v1023_v7 }
 0xfa3   :  { %1618 = vmatprep.mubr.bf16.mxu0 %v2338_v1 }
 0xfe1   :  { %v1386_v35 = vpop.f32.mrb[28].mxu1 }
 0xfe2   :  { %v1388_v46 = vpop.f32.mrb[29].mxu1 }
 0xfe3   :  { %v1390_v57 = vpop.f32.mrb[30].mxu1 }
 0xfe4   :  { %v1391_v24 = vpop.f32.mrb[31].mxu1 }
0x105d   :  { %v1215_v51 = vpop.f32.mrb[20].mxu0 }
0x105e   :  { %v1217_v25 = vpop.f32.mrb[21].mxu0  ;;  %v2979_v10 = vadd.f32 %v1259_v63, %v1215_v51 }
0x105f   :  { %v1219_v20 = vpop.f32.mrb[22].mxu0  ;;  %v2991_v27 = vadd.f32 %v1263_v52, %v1217_v25 }
0x1060   :  { %v2923_v2 = vadd.f32 %v1259_v63, %v1219_v20  ;;  %v1221_v37 = vpop.f32.mrb[23].mxu0 }
0x1061   :  { %v2925_v38 = vadd.f32 %v1263_v52, %v1221_v37 }
0x1065   :  { %v1225_v41 = vpop.f32.mrb[24].mxu0 }
0x1066   :  { %v2927_v43 = vadd.f32 %v1259_v63, %v1225_v41  ;;  %v1227_v55 = vpop.f32.mrb[25].mxu0 }
0x1067   :  { %v2929_v28 = vadd.f32 %v1263_v52, %v1227_v55  ;;  %v1229_v56 = vpop.f32.mrb[26].mxu0 }
0x1068   :  { %v2931_v5 = vadd.f32 %v1259_v63, %v1229_v56  ;;  %v1231_v19 = vpop.f32.mrb[27].mxu0 }
0x1069   :  { %v2933_v58 = vadd.f32 %v1263_v52, %v1231_v19 }
0x106d   :  { %v1235_v18 = vpop.f32.mrb[28].mxu0 }
0x106e   :  { %v2935_v21 = vadd.f32 %v1259_v63, %v1235_v18  ;;  %v1237_v36 = vpop.f32.mrb[29].mxu0 }
0x106f   :  { %v2937_v48 = vadd.f32 %v1263_v52, %v1237_v36  ;;  %v1239_v22 = vpop.f32.mrb[30].mxu0 }
0x1070   :  { %v2939_v31 = vadd.f32 %v1259_v63, %v1239_v22  ;;  %v1241_v40 = vpop.f32.mrb[31].mxu0  ;;  %v1577_v53 = vsel %vm2521_vm1, %v2931_v5, %v2935_v21  ;;  %v1651_v23 = vsel %vm2521_vm1, %v2935_v21, %v2931_v5 }
0x1071   :  { %v2949_v62 = vadd.f32 %v1263_v52, %v1241_v40  ;;  %v1578_v17 = vsel %vm2525_vm2, %v2933_v58, %v2937_v48  ;;  %v1652_v4 = vsel %vm2525_vm2, %v2937_v48, %v2933_v58 }
0x1072   :  { %v1499_v3 = vsel %vm2521_vm1, %v2927_v43, %v2939_v31  ;;  %v1725_v60 = vsel %vm2521_vm1, %v2939_v31, %v2927_v43 }
0x1073   :  { %v1500_v12 = vsel %vm2525_vm2, %v2929_v28, %v2949_v62  ;;  %v1726_v26 = vsel %vm2525_vm2, %v2949_v62, %v2929_v28 }
0x1075   :  { %v1245_v33 = vpop.f32.mrb[32].mxu0 }
0x1076   :  { %v2975_v61 = vadd.f32 %v1259_v63, %v1245_v33  ;;  %v1247_v8 = vpop.f32.mrb[33].mxu0 }
0x1077   :  { %v2977_v13 = vadd.f32 %v1263_v52, %v1247_v8  ;;  %v1249_v9 = vpop.f32.mrb[34].mxu0 }
0x1078   :  { %v2981_v11 = vadd.f32 %v1259_v63, %v1249_v9  ;;  %v1251_v14 = vpop.f32.mrb[35].mxu0  ;;  %v1421_v15 = vsel %vm2521_vm1, %v2923_v2, %v2975_v61  ;;  %v1799_v16 = vsel %vm2521_vm1, %v2975_v61, %v2923_v2 }
0x1079   :  { %v2993_v29 = vadd.f32 %v1263_v52, %v1251_v14  ;;  %v1422_v59 = vsel %vm2525_vm2, %v2925_v38, %v2977_v13  ;;  %v1800_v34 = vsel %vm2525_vm2, %v2977_v13, %v2925_v38 }
0x107a   :  { %v1310_v47 = vsel %vm2521_vm1, %v2979_v10, %v2981_v11  ;;  %v1873_v7 = vsel %vm2521_vm1, %v2981_v11, %v2979_v10 }
0x107b   :  { %v1393_v57 = vadd.f32 %v1386_v35, %v1310_v47  ;;  %v1311_v24 = vsel %vm2525_vm2, %v2991_v27, %v2993_v29  ;;  %v1874_v39 = vsel %vm2525_vm2, %v2993_v29, %v2991_v27 }
0x107c   :  { %v1394_v51 = vadd.f32 %v1388_v46, %v1311_v24 }
0x107d   :  { %v2052_v63 = vmul.f32 -1.442695, %v1393_v57 }
0x107e   :  { %v2053_v41 = vmul.f32 -1.442695, %v1394_v51 }
0x107f   :  { %2242 = vpow2.f32 %v2052_v63 }
0x1080   :  { %2244 = vtanh.f32 %v1394_v51 }
0x1089   :  { %v2243_v25 = vpop.eup %2242 }
0x108a   :  { %v1398_v52 = vadd.f32 1.0, %v2243_v25  ;;  %v2245_v20 = vpop.eup %2244 }
0x108c   :  { %2246 = vrcp.f32 %v1398_v52 }
0x108d   :  { %2248 = vpow2.f32 %v2053_v41 }
0x1096   :  { %v2247_v37 = vpop.eup %2246 }
0x1097   :  { %v1409_v35 = vmul.f32 %v2247_v37, %v2245_v20  ;;  %v2249_v55 = vpop.eup %2248  ;;  %v1408_v19 = vmul.f32 0.0, %v2247_v37 }
0x1098   :  { %v1405_v56 = vadd.f32 1.0, %v2249_v55 }
0x1099   :  { %1411 = vrot.lane.b32.xlu1 %v1409_v35, %s2339_s3 }
0x109a   :  { %2250 = vrcp.f32 %v1405_v56 }
0x10a4   :  { %v2251_v46 = vpop.eup %2250 }
0x110b   :  { %v1412_v18 = vpop.permute.xlu1 %1411 }
0x110c   :  { %v1414_v36 = vadd.f32 %v1412_v18, %v1408_v19 }
0x110e   :  { %2252 = vtanh.f32 %v1414_v36 }
0x1118   :  { %v2253_v22 = vpop.eup %2252 }
0x1119   :  { %v1416_v40 = vmul.f32 %v2253_v22, %v2251_v46 }
0x111b   :  { %v1423_v33 = vpack.c.bf16 %v1416_v40, %v1416_v40 }
0x111d   :  { %1425 = vrot.lane.b32.xlu0 %v1423_v33, %s2339_s3 }
0x118f   :  { %v1426_v8 = vpop.permute.xlu0 %1425 }
0x1190   :  { %2054 = vmatmul.mubr.msk.bf16.vlgmr.msra.gmra.mrb[32].mxu1 %vm293_vm3, %v1426_v8 }
0x1191   :  { %1509 = vmatpush1.bf16.msra.mxu1 %v2823_v49  ;;  %1540 = vmatprep.mubr.bf16.mxu1 %v2338_v1 }
0x1192   :  { %1510 = vmatprep.subr.bf16.mxu1 %v2829_v30 }
0x1195   :  { %1511 = vmatpush1.bf16.msra.mxu1 %v2836_v32 }
0x1196   :  { %1512 = vmatprep.subr.bf16.mxu1 %v2841_v0 }
0x1199   :  { %1513 = vmatpush1.bf16.msra.mxu1 %v2847_v50 }
0x119a   :  { %1514 = vmatprep.subr.bf16.mxu1 %v2853_v6 }
0x119d   :  { %1515 = vmatpush1.bf16.msra.mxu1 %v2860_v54 }
0x119e   :  { %1660 = vmatprep.subr.bf16.mxu1 %v2818_v44 }
0x1263   :  { %v1464_v9 = vpop.f32.mrb[32].mxu1 }
0x1264   :  { %v1471_v14 = vadd.f32 %v1464_v9, %v1421_v15  ;;  %v1466_v47 = vpop.f32.mrb[33].mxu1 }
0x1265   :  { %v1472_v57 = vadd.f32 %v1466_v47, %v1422_v59  ;;  %v1468_v24 = vpop.f32.mrb[34].mxu1 }
0x1266   :  { %v2055_v51 = vmul.f32 -1.442695, %v1471_v14  ;;  %v1469_v63 = vpop.f32.mrb[35].mxu1 }
0x1267   :  { %v2056_v41 = vmul.f32 -1.442695, %v1472_v57 }
0x1268   :  { %2254 = vpow2.f32 %v2055_v51 }
0x1269   :  { %2256 = vtanh.f32 %v1472_v57 }
0x1272   :  { %v2255_v25 = vpop.eup %2254 }
0x1273   :  { %v1476_v52 = vadd.f32 1.0, %v2255_v25  ;;  %v2257_v20 = vpop.eup %2256 }
0x1275   :  { %2258 = vrcp.f32 %v1476_v52 }
0x1276   :  { %2260 = vpow2.f32 %v2056_v41 }
0x127f   :  { %v2259_v37 = vpop.eup %2258 }
0x1280   :  { %v1487_v35 = vmul.f32 %v2259_v37, %v2257_v20  ;;  %v2261_v55 = vpop.eup %2260  ;;  %v1486_v15 = vmul.f32 %v2259_v37, %v1414_v36 }
0x1281   :  { %v1483_v56 = vadd.f32 1.0, %v2261_v55 }
0x1282   :  { %1489 = vrot.lane.b32.xlu1 %v1487_v35, %s2339_s3 }
0x1283   :  { %2262 = vrcp.f32 %v1483_v56 }
0x128d   :  { %v2263_v18 = vpop.eup %2262 }
0x12f4   :  { %v1490_v19 = vpop.permute.xlu1 %1489 }
0x12f5   :  { %v1492_v59 = vadd.f32 %v1490_v19, %v1486_v15 }
0x12f7   :  { %2264 = vtanh.f32 %v1492_v59 }
0x1301   :  { %v2265_v46 = vpop.eup %2264 }
0x1302   :  { %v1494_v22 = vmul.f32 %v2265_v46, %v2263_v18 }
0x1304   :  { %v1501_v40 = vpack.c.bf16 %v1494_v22, %v1494_v22 }
0x1306   :  { %1503 = vrot.lane.b32.xlu0 %v1501_v40, %s2339_s3 }
0x1378   :  { %v1504_v33 = vpop.permute.xlu0 %1503 }
0x1379   :  { %2057 = vmatmul.mubr.msk.bf16.vlgmr.msra.gmra.mrb[36].mxu1 %vm293_vm3, %v1504_v33 }
0x137a   :  { %1661 = vmatpush1.bf16.msra.mxu1 %v2823_v49  ;;  %1692 = vmatprep.mubr.bf16.mxu1 %v2338_v1 }
0x137b   :  { %1662 = vmatprep.subr.bf16.mxu1 %v2829_v30 }
0x137e   :  { %1663 = vmatpush1.bf16.msra.mxu1 %v2836_v32 }
0x137f   :  { %1664 = vmatprep.subr.bf16.mxu1 %v2841_v0 }
0x1382   :  { %1665 = vmatpush1.bf16.msra.mxu1 %v2847_v50 }
0x1383   :  { %1666 = vmatprep.subr.bf16.mxu1 %v2853_v6 }
0x1386   :  { %1667 = vmatpush1.bf16.msra.mxu1 %v2860_v54 }
0x1387   :  { %1808 = vmatprep.subr.bf16.mxu1 %v2818_v44 }
0x144c   :  { %v1542_v36 = vpop.f32.mrb[36].mxu1 }
0x144d   :  { %v1549_v8 = vadd.f32 %v1542_v36, %v1499_v3  ;;  %v1544_v9 = vpop.f32.mrb[37].mxu1 }
0x144e   :  { %v1550_v14 = vadd.f32 %v1544_v9, %v1500_v12  ;;  %v1546_v47 = vpop.f32.mrb[38].mxu1 }
0x144f   :  { %v2058_v57 = vmul.f32 -1.442695, %v1549_v8  ;;  %v1547_v24 = vpop.f32.mrb[39].mxu1 }
0x1450   :  { %v2059_v3 = vmul.f32 -1.442695, %v1550_v14 }
0x1451   :  { %2266 = vpow2.f32 %v2058_v57 }
0x1452   :  { %2268 = vtanh.f32 %v1550_v14 }
0x145b   :  { %v2267_v51 = vpop.eup %2266 }
0x145c   :  { %v1554_v63 = vadd.f32 1.0, %v2267_v51  ;;  %v2269_v25 = vpop.eup %2268 }
0x145e   :  { %2270 = vrcp.f32 %v1554_v63 }
0x145f   :  { %2272 = vpow2.f32 %v2059_v3 }
0x1468   :  { %v2271_v52 = vpop.eup %2270 }
0x1469   :  { %v1565_v20 = vmul.f32 %v2271_v52, %v2269_v25  ;;  %v2273_v37 = vpop.eup %2272  ;;  %v1564_v41 = vmul.f32 %v2271_v52, %v1492_v59 }
0x146a   :  { %v1561_v35 = vadd.f32 1.0, %v2273_v37 }
0x146b   :  { %1567 = vrot.lane.b32.xlu1 %v1565_v20, %s2339_s3 }
0x146c   :  { %2274 = vrcp.f32 %v1561_v35 }
0x1476   :  { %v2275_v56 = vpop.eup %2274 }
0x14dd   :  { %v1568_v55 = vpop.permute.xlu1 %1567 }
0x14de   :  { %v1570_v12 = vadd.f32 %v1568_v55, %v1564_v41 }
0x14e0   :  { %2276 = vtanh.f32 %v1570_v12 }
0x14ea   :  { %v2277_v15 = vpop.eup %2276 }
0x14eb   :  { %v1572_v19 = vmul.f32 %v2277_v15, %v2275_v56 }
0x14ed   :  { %v1579_v18 = vpack.c.bf16 %v1572_v19, %v1572_v19 }
0x14ef   :  { %1581 = vrot.lane.b32.xlu0 %v1579_v18, %s2339_s3 }
0x1561   :  { %v1582_v46 = vpop.permute.xlu0 %1581 }
0x1562   :  { %2060 = vmatmul.mubr.msk.bf16.vlgmr.msra.gmra.mrb[36].mxu0 %vm293_vm3, %v1582_v46 }
0x1563   :  { %1735 = vmatpush1.bf16.msra.mxu0 %v2823_v49  ;;  %1766 = vmatprep.mubr.bf16.mxu0 %v2338_v1 }
0x1564   :  { %1736 = vmatprep.subr.bf16.mxu0 %v2829_v30 }
0x1567   :  { %1737 = vmatpush1.bf16.msra.mxu0 %v2836_v32 }
0x1568   :  { %1738 = vmatprep.subr.bf16.mxu0 %v2841_v0 }
0x156b   :  { %1739 = vmatpush1.bf16.msra.mxu0 %v2847_v50 }
0x156c   :  { %1740 = vmatprep.subr.bf16.mxu0 %v2853_v6 }
0x156f   :  { %1741 = vmatpush1.bf16.msra.mxu0 %v2860_v54 }
0x1570   :  { %1882 = vmatprep.subr.bf16.mxu0 %v2818_v44 }
0x1635   :  { %v1620_v59 = vpop.f32.mrb[36].mxu0 }
0x1636   :  { %v1627_v22 = vadd.f32 %v1620_v59, %v1577_v53  ;;  %v1622_v40 = vpop.f32.mrb[37].mxu0 }
0x1637   :  { %v1628_v33 = vadd.f32 %v1622_v40, %v1578_v17  ;;  %v1624_v36 = vpop.f32.mrb[38].mxu0 }
0x1638   :  { %v2061_v8 = vmul.f32 -1.442695, %v1627_v22  ;;  %v1625_v9 = vpop.f32.mrb[39].mxu0 }
0x1639   :  { %v2062_v53 = vmul.f32 -1.442695, %v1628_v33 }
0x163a   :  { %2278 = vpow2.f32 %v2061_v8 }
0x163b   :  { %2280 = vtanh.f32 %v1628_v33 }
0x1644   :  { %v2279_v14 = vpop.eup %2278 }
0x1645   :  { %v1632_v44 = vadd.f32 1.0, %v2279_v14  ;;  %v2281_v47 = vpop.eup %2280 }
0x1647   :  { %2282 = vrcp.f32 %v1632_v44 }
0x1648   :  { %2284 = vpow2.f32 %v2062_v53 }
0x1651   :  { %v2283_v57 = vpop.eup %2282 }
0x1652   :  { %v1643_v24 = vmul.f32 %v2283_v57, %v2281_v47  ;;  %v2285_v51 = vpop.eup %2284  ;;  %v1642_v25 = vmul.f32 %v2283_v57, %v1570_v12 }
0x1653   :  { %v1639_v63 = vadd.f32 1.0, %v2285_v51 }
0x1654   :  { %1645 = vrot.lane.b32.xlu1 %v1643_v24, %s2339_s3 }
0x1655   :  { %2286 = vrcp.f32 %v1639_v63 }
0x165f   :  { %v2287_v20 = vpop.eup %2286 }
0x16c6   :  { %v1646_v52 = vpop.permute.xlu1 %1645 }
0x16c7   :  { %v1648_v17 = vadd.f32 %v1646_v52, %v1642_v25 }
0x16c9   :  { %2288 = vtanh.f32 %v1648_v17 }
0x16d3   :  { %v2289_v3 = vpop.eup %2288 }
0x16d4   :  { %v1650_v37 = vmul.f32 %v2289_v3, %v2287_v20 }
0x16d6   :  { %v1653_v35 = vpack.c.bf16 %v1650_v37, %v1650_v37 }
0x16d8   :  { %1655 = vrot.lane.b32.xlu0 %v1653_v35, %s2339_s3 }
0x174a   :  { %v1656_v41 = vpop.permute.xlu0 %1655 }
0x174b   :  { %2063 = vmatmul.mubr.msk.bf16.vlgmr.msra.gmra.mrb[40].mxu1 %vm293_vm3, %v1656_v41 }
0x174c   :  { %1809 = vmatpush1.bf16.msra.mxu1 %v2823_v49  ;;  %1840 = vmatprep.mubr.bf16.mxu1 %v2338_v1 }
0x174d   :  { %1810 = vmatprep.subr.bf16.mxu1 %v2829_v30 }
0x1750   :  { %1811 = vmatpush1.bf16.msra.mxu1 %v2836_v32 }
0x1751   :  { %1812 = vmatprep.subr.bf16.mxu1 %v2841_v0 }
0x1754   :  { %1813 = vmatpush1.bf16.msra.mxu1 %v2847_v50 }
0x1755   :  { %1814 = vmatprep.subr.bf16.mxu1 %v2853_v6 }
0x1758   :  { %1815 = vmatpush1.bf16.msra.mxu1 %v2860_v54 }
0x181e   :  { %v1694_v55 = vpop.f32.mrb[40].mxu1 }
0x181f   :  { %v1701_v12 = vadd.f32 %v1694_v55, %v1651_v23  ;;  %v1696_v56 = vpop.f32.mrb[41].mxu1 }
0x1820   :  { %v1702_v15 = vadd.f32 %v1696_v56, %v1652_v4  ;;  %v1698_v19 = vpop.f32.mrb[42].mxu1 }
0x1821   :  { %v2064_v18 = vmul.f32 -1.442695, %v1701_v12  ;;  %v1699_v46 = vpop.f32.mrb[43].mxu1 }
0x1822   :  { %v2065_v5 = vmul.f32 -1.442695, %v1702_v15 }
0x1823   :  { %2290 = vpow2.f32 %v2064_v18 }
0x1824   :  { %2292 = vtanh.f32 %v1702_v15 }
0x182d   :  { %v2291_v59 = vpop.eup %2290 }
0x182e   :  { %v1706_v22 = vadd.f32 1.0, %v2291_v59  ;;  %v2293_v40 = vpop.eup %2292 }
0x1830   :  { %2294 = vrcp.f32 %v1706_v22 }
0x1831   :  { %2296 = vpow2.f32 %v2065_v5 }
0x183a   :  { %v2295_v33 = vpop.eup %2294 }
0x183b   :  { %v1717_v36 = vmul.f32 %v2295_v33, %v2293_v40  ;;  %v2297_v21 = vpop.eup %2296  ;;  %v1716_v8 = vmul.f32 %v2295_v33, %v1648_v17 }
0x183c   :  { %v1713_v23 = vadd.f32 1.0, %v2297_v21  ;;  %v2075_v21 = vld [vmem:[%s3164_s8] ss:$0 sm:$0xff] }
0x183d   :  { %1719 = vrot.lane.b32.xlu1 %v1717_v36, %s2339_s3 }
0x183e   :  { %2298 = vrcp.f32 %v1713_v23 }
0x1848   :  { %v2299_v4 = vpop.eup %2298 }
0x18af   :  { %v1720_v58 = vpop.permute.xlu1 %1719 }
0x18b0   :  { %v1722_v48 = vadd.f32 %v1720_v58, %v1716_v8 }
0x18b2   :  { %2300 = vtanh.f32 %v1722_v48 }
0x18bc   :  { %v2301_v9 = vpop.eup %2300 }
0x18bd   :  { %v1724_v14 = vmul.f32 %v2301_v9, %v2299_v4 }
0x18bf   :  { %v1727_v44 = vpack.c.bf16 %v1724_v14, %v1724_v14 }
0x18c1   :  { %1729 = vrot.lane.b32.xlu0 %v1727_v44, %s2339_s3 }
0x1933   :  { %v1730_v47 = vpop.permute.xlu0 %1729 }
0x1934   :  { %2066 = vmatmul.mubr.msk.bf16.vlgmr.msra.gmra.mrb[40].mxu0 %vm293_vm3, %v1730_v47 }
0x1935   :  { %1883 = vmatpush1.bf16.msra.mxu0 %v2823_v49  ;;  %1914 = vmatprep.mubr.bf16.mxu0 %v2338_v1 }
0x1936   :  { %1884 = vmatprep.subr.bf16.mxu0 %v2829_v30 }
0x1939   :  { %1885 = vmatpush1.bf16.msra.mxu0 %v2836_v32 }
0x193a   :  { %1886 = vmatprep.subr.bf16.mxu0 %v2841_v0 }
0x193d   :  { %1887 = vmatpush1.bf16.msra.mxu0 %v2847_v50 }
0x193e   :  { %1888 = vmatprep.subr.bf16.mxu0 %v2853_v6 }
0x1941   :  { %1889 = vmatpush1.bf16.msra.mxu0 %v2860_v54 }
0x1a07   :  { %v1768_v57 = vpop.f32.mrb[40].mxu0 }
0x1a08   :  { %v1775_v49 = vadd.f32 %v1768_v57, %v1725_v60  ;;  %v1770_v1 = vpop.f32.mrb[41].mxu0 }
0x1a09   :  { %v1776_v30 = vadd.f32 %v1770_v1, %v1726_v26  ;;  %v1772_v32 = vpop.f32.mrb[42].mxu0 }
0x1a0a   :  { %v2067_v0 = vmul.f32 -1.442695, %v1775_v49  ;;  %v1773_v50 = vpop.f32.mrb[43].mxu0 }
0x1a0b   :  { %v2068_v43 = vmul.f32 -1.442695, %v1776_v30 }
0x1a0c   :  { %2302 = vpow2.f32 %v2067_v0 }
0x1a0d   :  { %2304 = vtanh.f32 %v1776_v30 }
0x1a16   :  { %v2303_v6 = vpop.eup %2302 }
0x1a17   :  { %v1780_v54 = vadd.f32 1.0, %v2303_v6  ;;  %v2305_v24 = vpop.eup %2304 }
0x1a19   :  { %2306 = vrcp.f32 %v1780_v54 }
0x1a1a   :  { %2308 = vpow2.f32 %v2068_v43 }
0x1a23   :  { %v2307_v53 = vpop.eup %2306 }
0x1a24   :  { %v1791_v51 = vmul.f32 %v2307_v53, %v2305_v24  ;;  %v2309_v31 = vpop.eup %2308  ;;  %v1790_v63 = vmul.f32 %v2307_v53, %v1722_v48 }
0x1a25   :  { %v1787_v60 = vadd.f32 1.0, %v2309_v31 }
0x1a26   :  { %1793 = vrot.lane.b32.xlu1 %v1791_v51, %s2339_s3 }
0x1a27   :  { %2310 = vrcp.f32 %v1787_v60 }
0x1a31   :  { %v2311_v26 = vpop.eup %2310 }
0x1a98   :  { %v1794_v28 = vpop.permute.xlu1 %1793 }
0x1a99   :  { %v1796_v62 = vadd.f32 %v1794_v28, %v1790_v63 }
0x1a9b   :  { %2312 = vtanh.f32 %v1796_v62 }
0x1aa5   :  { %v2313_v25 = vpop.eup %2312 }
0x1aa6   :  { %v1798_v52 = vmul.f32 %v2313_v25, %v2311_v26 }
0x1aa8   :  { %v1801_v17 = vpack.c.bf16 %v1798_v52, %v1798_v52 }
0x1aaa   :  { %1803 = vrot.lane.b32.xlu0 %v1801_v17, %s2339_s3 }
0x1b1c   :  { %v1804_v20 = vpop.permute.xlu0 %1803 }
0x1b1d   :  { %2069 = vmatmul.mubr.msk.bf16.vlgmr.msra.gmra.mrb[44].mxu1 %vm293_vm3, %v1804_v20 }
0x1bf0   :  { %v1842_v3 = vpop.f32.mrb[44].mxu1 }
0x1bf1   :  { %v1849_v37 = vadd.f32 %v1842_v3, %v1799_v16  ;;  %v1844_v35 = vpop.f32.mrb[45].mxu1 }
0x1bf2   :  { %v1850_v41 = vadd.f32 %v1844_v35, %v1800_v34  ;;  %v1846_v55 = vpop.f32.mrb[46].mxu1 }
0x1bf3   :  { %v2070_v12 = vmul.f32 -1.442695, %v1849_v37  ;;  %v1847_v56 = vpop.f32.mrb[47].mxu1 }
0x1bf4   :  { %v2071_v2 = vmul.f32 -1.442695, %v1850_v41 }
0x1bf5   :  { %2314 = vpow2.f32 %v2070_v12 }
0x1bf6   :  { %2316 = vtanh.f32 %v1850_v41 }
0x1bff   :  { %v2315_v15 = vpop.eup %2314 }
0x1c00   :  { %v1854_v19 = vadd.f32 1.0, %v2315_v15  ;;  %v2317_v18 = vpop.eup %2316 }
0x1c02   :  { %2318 = vrcp.f32 %v1854_v19 }
0x1c03   :  { %2320 = vpow2.f32 %v2071_v2 }
0x1c0c   :  { %v2319_v46 = vpop.eup %2318 }
0x1c0d   :  { %v1865_v59 = vmul.f32 %v2319_v46, %v2317_v18  ;;  %v2321_v61 = vpop.eup %2320  ;;  %v1864_v22 = vmul.f32 %v2319_v46, %v1796_v62 }
0x1c0e   :  { %v1861_v16 = vadd.f32 1.0, %v2321_v61 }
0x1c0f   :  { %1867 = vrot.lane.b32.xlu1 %v1865_v59, %s2339_s3 }
0x1c10   :  { %2322 = vrcp.f32 %v1861_v16 }
0x1c1a   :  { %v2323_v34 = vpop.eup %2322 }
0x1c81   :  { %v1868_v38 = vpop.permute.xlu1 %1867 }
0x1c82   :  { %v1870_v13 = vadd.f32 %v1868_v38, %v1864_v22 }
0x1c84   :  { %2324 = vtanh.f32 %v1870_v13 }
0x1c8e   :  { %v2325_v40 = vpop.eup %2324 }
0x1c8f   :  { %v1872_v33 = vmul.f32 %v2325_v40, %v2323_v34 }
0x1c91   :  { %v1875_v36 = vpack.c.bf16 %v1872_v33, %v1872_v33 }
0x1c93   :  { %1877 = vrot.lane.b32.xlu0 %v1875_v36, %s2339_s3 }
0x1c97   :  { %1953 = vrot.lane.b32.xlu0 %v2075_v21, %s2339_s3 }
0x1d05   :  { %v1878_v5 = vpop.permute.xlu0 %1877 }
0x1d06   :  { %2072 = vmatmul.mubr.msk.bf16.vlgmr.msra.gmra.mrb[44].mxu0 %vm293_vm3, %v1878_v5 }
0x1d09   :  { %v1954_v32 = vpop.permute.xlu0 %1953 }
0x1dd9   :  { %v1916_v23 = vpop.f32.mrb[44].mxu0 }
0x1dda   :  { %v1923_v8 = vadd.f32 %v1916_v23, %v1873_v7  ;;  %v1918_v58 = vpop.f32.mrb[45].mxu0 }
0x1ddb   :  { %v1924_v48 = vadd.f32 %v1918_v58, %v1874_v39  ;;  %v1920_v4 = vpop.f32.mrb[46].mxu0  ;;  %v15_v39 = vstv %s3165_s9 }
0x1ddc   :  { %v2073_v9 = vmul.f32 -1.442695, %v1923_v8  ;;  %v1921_v14 = vpop.f32.mrb[47].mxu0  ;;  %16 = vst [vmem:[#allocation5] sm:$0x1] %v15_v39 }
0x1ddd   :  { %v2074_v10 = vmul.f32 -1.442695, %v1924_v48 }
0x1dde   :  { %2326 = vpow2.f32 %v2073_v9 }
0x1ddf   :  { %2328 = vtanh.f32 %v1924_v48 }
0x1de3   :  { %v2076_v24 = vld [vmem:[#allocation5] ss:$0 sm:$0xff] }
0x1de8   :  { %v2327_v44 = vpop.eup %2326 }
0x1de9   :  { %v1928_v47 = vadd.f32 1.0, %v2327_v44  ;;  %v2329_v42 = vpop.eup %2328 }
0x1deb   :  { %2330 = vrcp.f32 %v1928_v47 }
0x1dec   :  { %2332 = vpow2.f32 %v2074_v10 }
0x1df5   :  { %v2331_v57 = vpop.eup %2330 }
0x1df6   :  { %v1939_v49 = vmul.f32 %v2331_v57, %v2329_v42  ;;  %v2333_v45 = vpop.eup %2332  ;;  %v1938_v7 = vmul.f32 %v2331_v57, %v1870_v13 }
0x1df7   :  { %v1935_v11 = vadd.f32 1.0, %v2333_v45 }
0x1df8   :  { %1941 = vrot.lane.b32.xlu1 %v1939_v49, %s2339_s3 }
0x1df9   :  { %2334 = vrcp.f32 %v1935_v11 }
0x1e03   :  { %v2335_v1 = vpop.eup %2334 }
0x1e6a   :  { %v1942_v27 = vpop.permute.xlu1 %1941 }
0x1e6b   :  { %v1944_v29 = vadd.f32 %v1942_v27, %v1938_v7 }
0x1e6d   :  { %2336 = vtanh.f32 %v1944_v29 }
0x1e77   :  { %v2337_v30 = vpop.eup %2336 }
0x1e78   :  { %v1946_v0 = vmul.f32 %v2337_v30, %v2335_v1 }
0x1e7a   :  { %v1956_v50 = vmul.f32 %v1954_v32, %v1946_v0 }
0x1e7c   :  { %1958 = vrot.lane.b32.xlu1 %v1956_v50, %s2339_s3 }
0x1eee   :  { %v1959_v6 = vpop.permute.xlu1 %1958 }
0x1eef   :  { %v1961_v54 = vsel %vm293_vm3, %v1959_v6, 0.0 }
0x1ef0   :  { %1962 = vadd.xlane.f32.xlu0 %v1961_v54 }
0x1f7d   :  { %v1963_v53 = vpop.xlane.xlu0 %1962 }
0x1f7e   :  { %v1971_v51 = vadd.f32 %v2076_v24, %v1963_v53 }
0x1f80   :  { %1973 = vst.msk [vmem:[%s3166_s10] sm:$0xff] %vm1972_vm4, %v1971_v51 }

</bundles_post_ra>
